<compile_context>
chip_gen: v7x
topology: tpu7x:2x2x1
jax: 0.10.0
libtpu: 0.0.40
codegen_flags: <defaults>
</compile_context>

<pallas_src>
import jax
import jax.numpy as jnp
from jax.experimental import pallas as pl
from jax.experimental.pallas import tpu as pltpu


# ----------------------------- Pallas kernel --------------------------------
def mfgsn_fused_kernel(a_ref, x_ref, w1_ref, b1_ref, w2_ref, b2_ref, o_ref):
    """Fused 2-layer GCN:  relu(A @ relu(A @ (X W1) + b1) W2 + b2)."""
    a_bf = a_ref[...].astype(jnp.bfloat16)                       # [N, N]   VPU cast
    x_bf = x_ref[...].astype(jnp.bfloat16)                       # [N, Fin] VPU cast

    # ---- layer 1 ----
    xw1 = jnp.dot(x_bf, w1_ref[...],
                  preferred_element_type=jnp.float32)            # [N, 512] MXU
    h1 = jnp.dot(a_bf, xw1.astype(jnp.bfloat16),
                 preferred_element_type=jnp.float32)             # [N, 512] MXU
    h1 = jnp.maximum(h1 + b1_ref[...], 0.0).astype(jnp.bfloat16)  # VPU, stays on-chip

    # ---- layer 2 ----
    hw2 = jnp.dot(h1, w2_ref[...],
                  preferred_element_type=jnp.float32)            # [N, 256] MXU
    out = jnp.dot(a_bf, hw2.astype(jnp.bfloat16),
                  preferred_element_type=jnp.float32)            # [N, 256] MXU
    o_ref[...] = jnp.maximum(out + b2_ref[...], 0.0)             # VPU, f32 out


def mfgsn_fused(a_hat, x, w1_bf, b1, w2_bf, b2):
    """Single pallas_call for the whole MFGsN forward hot path."""
    n = x.shape[0]
    f_out = w2_bf.shape[1]

    # N=16 is tiny: one grid step, full-array blocks.  Do NOT tile/split the
    # K=1728 contraction — the grid is a serial loop on TPU and this kernel is
    # launch/HBM-bound (dominated by the bf16 W1 read), not MXU-bound.
    # TODO(synk): if N grows into the thousands, replace the dense [N,N] A_hat
    # block with a row-tiled grid (parallel over node tiles, arbitrary over the
    # contraction) or a scalar-prefetch SpMV; dense A_hat at N=4096 no longer
    # fits v7x VMEM.
    return pl.pallas_call(
        mfgsn_fused_kernel,
        out_shape=jax.ShapeDtypeStruct((n, f_out), jnp.float32),
        grid=(1,),
        in_specs=[
            pl.BlockSpec(a_hat.shape, lambda i: (0, 0)),   # A_hat [N, N]      f32
            pl.BlockSpec(x.shape, lambda i: (0, 0)),       # X     [N, 1728]   f32
            pl.BlockSpec(w1_bf.shape, lambda i: (0, 0)),   # W1    [1728, 512] bf16
            pl.BlockSpec(b1.shape, lambda i: (0, 0)),      # b1    [1, 512]    f32
            pl.BlockSpec(w2_bf.shape, lambda i: (0, 0)),   # W2    [512, 256]  bf16
            pl.BlockSpec(b2.shape, lambda i: (0, 0)),      # b2    [1, 256]    f32
        ],
        out_specs=pl.BlockSpec((n, f_out), lambda i: (0, 0)),
        compiler_params=pltpu.CompilerParams(
            dimension_semantics=("arbitrary",),
            # ~4.5 MB resident even double-buffered; 32 MiB leaves headroom on
            # every generation (v7x total VMEM is only 64 MiB).
            vmem_limit_bytes=32 << 20,
        ),
    )(a_hat, x, w1_bf, b1, w2_bf, b2)


# ----------------------------- JAX glue --------------------------------------
def build_gcn_adjacency(edge_index, edge_weight, num_nodes):
    """Dense A_hat = D^-1/2 (A + I) D^-1/2, matching PyG gcn_norm defaults
    (add_self_loops=True, fill_value=1.0, improved=False)."""
    n = num_nodes
    row, col = edge_index[0], edge_index[1]              # source, target
    loop = jnp.arange(n, dtype=edge_index.dtype)
    row = jnp.concatenate([row, loop])
    col = jnp.concatenate([col, loop])
    w = jnp.concatenate([edge_weight, jnp.ones((n,), edge_weight.dtype)])
    deg = jnp.zeros((n,), jnp.float32).at[col].add(w)
    deg_inv_sqrt = jnp.where(deg > 0, jax.lax.rsqrt(deg), 0.0)
    norm = deg_inv_sqrt[row] * w * deg_inv_sqrt[col]
    # message flows source(row) -> target(col):  out[col] += norm * x[row]
    a_hat = jnp.zeros((n, n), jnp.float32).at[col, row].add(norm)
    return a_hat


def prepare_params(params):
    """One-time bf16 cast of the matmul weights (done OUTSIDE the jitted
    forward so the large W1 cast is not re-executed on every call)."""
    return {
        "w1": params["w1"].astype(jnp.bfloat16),
        "b1": params["b1"],
        "w2": params["w2"].astype(jnp.bfloat16),
        "b2": params["b2"],
    }


@jax.jit
def mfgsn_forward(prepared, x, edge_index, edge_weight):
    """MFGsN.forward:  relu(gcn2(relu(gcn1(x)))) — one fused Pallas kernel."""
    n = x.shape[0]
    a_hat = build_gcn_adjacency(edge_index, edge_weight, n)
    return mfgsn_fused(a_hat, x,
                       prepared["w1"], prepared["b1"],
                       prepared["w2"], prepared["b2"])     # [N, 256]


@jax.jit
def mfgsn_reference(params, x, edge_index, edge_weight):
    """Pure-JAX f32 reference for sanity checking."""
    n = x.shape[0]
    a_hat = build_gcn_adjacency(edge_index, edge_weight, n)
    h = jnp.maximum(a_hat @ (x @ params["w1"]) + params["b1"], 0.0)
    return jnp.maximum(a_hat @ (h @ params["w2"]) + params["b2"], 0.0)


def init_params(key):
    """Deterministic synthetic init (glorot-ish scaling, zero bias like PyG)."""
    k1, k2 = jax.random.split(key)
    f_in1, f_out1 = 1728, 512
    f_in2, f_out2 = 512, 256
    w1 = jax.random.normal(k1, (f_in1, f_out1), jnp.float32) * (
        (2.0 / (f_in1 + f_out1)) ** 0.5)
    w2 = jax.random.normal(k2, (f_in2, f_out2), jnp.float32) * (
        (2.0 / (f_in2 + f_out2)) ** 0.5)
    b1 = jnp.zeros((1, f_out1), jnp.float32)
    b2 = jnp.zeros((1, f_out2), jnp.float32)
    return {"w1": w1, "b1": b1, "w2": w2, "b2": b2}


if __name__ == "__main__":
    key = jax.random.PRNGKey(0)
    k_x, k_e, k_w, k_p = jax.random.split(key, 4)

    N = 16          # number of graph nodes (small)
    E = 48          # number of directed edges
    F_IN = 1728     # fixed by the module's GCNConv(in_channels=1728, ...)

    x = jax.random.normal(k_x, (N, F_IN), jnp.float32)
    edge_index = jax.random.randint(k_e, (2, E), 0, N, dtype=jnp.int32)
    edge_weight = jax.random.uniform(k_w, (E,), jnp.float32, 0.1, 1.0)

    params = init_params(k_p)
    prepared = prepare_params(params)   # bf16 weight cast, done once

    out = mfgsn_forward(prepared, x, edge_index, edge_weight)
    out = jax.block_until_ready(out)

    ref = jax.block_until_ready(
        mfgsn_reference(params, x, edge_index, edge_weight))

    assert out.shape == (N, 256), out.shape
    assert bool(jnp.all(jnp.isfinite(out)))
    # loose tolerance: bf16 MXU operands vs f32 XLA reference
    assert bool(jnp.allclose(out, ref, rtol=5e-2, atol=5e-1)), "mismatch vs reference"

    print("KERNEL_OK")
</pallas_src>

<mosaic_0001>
module attributes {stable_mosaic.version = 11 : i64} {
  func.func private @main(%arg0: i32) attributes {dimension_semantics = [#tpu.dimension_semantics<core_parallel>], iteration_bounds = array<i64: 2>, tpu.core_type = #tpu.core_type<sc_scalar_subcore>, window_params = []} {
    return
  }
}

module attributes {stable_mosaic.version = 11 : i64} {
  func.func private @main(%arg0: i32) attributes {dimension_semantics = [#tpu.dimension_semantics<core_parallel>], iteration_bounds = array<i64: 2>, tpu.core_type = #tpu.core_type<sc_scalar_subcore>, window_params = []} {
    return
  }
}

module attributes {stable_mosaic.version = 11 : i64} {
  func.func @mfgsn_fused_kernel(%arg0: i32, %arg1: memref<16x16xf32, #tpu.memory_space<vmem>>, %arg2: memref<16x1728xf32, #tpu.memory_space<vmem>>, %arg3: memref<1728x512xbf16, #tpu.memory_space<vmem>>, %arg4: memref<1x512xf32, #tpu.memory_space<vmem>>, %arg5: memref<512x256xbf16, #tpu.memory_space<vmem>>, %arg6: memref<1x256xf32, #tpu.memory_space<vmem>>, %arg7: memref<16x256xf32, #tpu.memory_space<vmem>>) attributes {dimension_semantics = [#tpu.dimension_semantics<arbitrary>], iteration_bounds = array<i64: 1>, scalar_prefetch = 0 : i64, scratch_operands = 0 : i64, tpu.core_type = #tpu.core_type<tc>, window_params = [{pipeline_mode = #tpu.pipeline_mode<synchronous>, transform_indices = @transform_0, window_bounds = array<i64: 16, 16>}, {pipeline_mode = #tpu.pipeline_mode<synchronous>, transform_indices = @transform_1, window_bounds = array<i64: 16, 1728>}, {pipeline_mode = #tpu.pipeline_mode<synchronous>, transform_indices = @transform_2, window_bounds = array<i64: 1728, 512>}, {pipeline_mode = #tpu.pipeline_mode<synchronous>, transform_indices = @transform_3, window_bounds = array<i64: 1, 512>}, {pipeline_mode = #tpu.pipeline_mode<synchronous>, transform_indices = @transform_4, window_bounds = array<i64: 512, 256>}, {pipeline_mode = #tpu.pipeline_mode<synchronous>, transform_indices = @transform_5, window_bounds = array<i64: 1, 256>}, {pipeline_mode = #tpu.pipeline_mode<synchronous>, transform_indices = @transform_6, window_bounds = array<i64: 16, 256>}]} {
    %c0 = arith.constant 0 : index
    %c0_0 = arith.constant 0 : index
    %0 = vector.load %arg1[%c0, %c0_0] : memref<16x16xf32, #tpu.memory_space<vmem>>, vector<16x16xf32>
    %1 = arith.truncf %0 : vector<16x16xf32> to vector<16x16xbf16>
    %c0_1 = arith.constant 0 : index
    %c0_2 = arith.constant 0 : index
    %2 = vector.load %arg2[%c0_1, %c0_2] : memref<16x1728xf32, #tpu.memory_space<vmem>>, vector<16x1728xf32>
    %3 = arith.truncf %2 : vector<16x1728xf32> to vector<16x1728xbf16>
    %c0_3 = arith.constant 0 : index
    %c0_4 = arith.constant 0 : index
    %4 = vector.load %arg3[%c0_3, %c0_4] : memref<1728x512xbf16, #tpu.memory_space<vmem>>, vector<1728x512xbf16>
    %cst = arith.constant dense<0.000000e+00> : vector<16x512xf32>
    %5 = tpu.matmul %3, %4, %cst {dimension_numbers = #tpu.dot_dimension_numbers<[1], [0], [0], [1], [0, 0, 1, 1], [], []>} : vector<16x1728xbf16>, vector<1728x512xbf16>, vector<16x512xf32> -> vector<16x512xf32>
    %6 = arith.truncf %5 : vector<16x512xf32> to vector<16x512xbf16>
    %cst_5 = arith.constant dense<0.000000e+00> : vector<16x512xf32>
    %7 = tpu.matmul %1, %6, %cst_5 {dimension_numbers = #tpu.dot_dimension_numbers<[1], [0], [0], [1], [0, 0, 1, 1], [], []>} : vector<16x16xbf16>, vector<16x512xbf16>, vector<16x512xf32> -> vector<16x512xf32>
    %c0_6 = arith.constant 0 : index
    %c0_7 = arith.constant 0 : index
    %8 = vector.load %arg4[%c0_6, %c0_7] : memref<1x512xf32, #tpu.memory_space<vmem>>, vector<1x512xf32>
    %9 = vector.broadcast %8 : vector<1x512xf32> to vector<16x512xf32>
    %10 = arith.addf %7, %9 : vector<16x512xf32>
    %cst_8 = arith.constant 0.000000e+00 : f32
    %11 = vector.broadcast %cst_8 : f32 to vector<16x512xf32>
    %12 = arith.maximumf %10, %11 : vector<16x512xf32>
    %13 = arith.truncf %12 : vector<16x512xf32> to vector<16x512xbf16>
    %c0_9 = arith.constant 0 : index
    %c0_10 = arith.constant 0 : index
    %14 = vector.load %arg5[%c0_9, %c0_10] : memref<512x256xbf16, #tpu.memory_space<vmem>>, vector<512x256xbf16>
    %cst_11 = arith.constant dense<0.000000e+00> : vector<16x256xf32>
    %15 = tpu.matmul %13, %14, %cst_11 {dimension_numbers = #tpu.dot_dimension_numbers<[1], [0], [0], [1], [0, 0, 1, 1], [], []>} : vector<16x512xbf16>, vector<512x256xbf16>, vector<16x256xf32> -> vector<16x256xf32>
    %16 = arith.truncf %15 : vector<16x256xf32> to vector<16x256xbf16>
    %cst_12 = arith.constant dense<0.000000e+00> : vector<16x256xf32>
    %17 = tpu.matmul %1, %16, %cst_12 {dimension_numbers = #tpu.dot_dimension_numbers<[1], [0], [0], [1], [0, 0, 1, 1], [], []>} : vector<16x16xbf16>, vector<16x256xbf16>, vector<16x256xf32> -> vector<16x256xf32>
    %c0_13 = arith.constant 0 : index
    %c0_14 = arith.constant 0 : index
    %18 = vector.load %arg6[%c0_13, %c0_14] : memref<1x256xf32, #tpu.memory_space<vmem>>, vector<1x256xf32>
    %19 = vector.broadcast %18 : vector<1x256xf32> to vector<16x256xf32>
    %20 = arith.addf %17, %19 : vector<16x256xf32>
    %cst_15 = arith.constant 0.000000e+00 : f32
    %21 = vector.broadcast %cst_15 : f32 to vector<16x256xf32>
    %22 = arith.maximumf %20, %21 : vector<16x256xf32>
    %c0_16 = arith.constant 0 : index
    %c0_17 = arith.constant 0 : index
    %23 = vector.load %arg7[%c0_16, %c0_17] : memref<16x256xf32, #tpu.memory_space<vmem>>, vector<16x256xf32>
    tpu.vector_store %arg7[%c0_16, %c0_17], %22 {strides = array<i32>} : memref<16x256xf32, #tpu.memory_space<vmem>>, vector<16x256xf32>,
    return
  }
  func.func @transform_0(%arg0: i32) -> (i32, i32) {
    %c0_i32 = arith.constant 0 : i32
    %c0_i32_0 = arith.constant 0 : i32
    %c0_i32_1 = arith.constant 0 : i32
    return %c0_i32, %c0_i32_0 : i32, i32
  }
  func.func @transform_1(%arg0: i32) -> (i32, i32) {
    %c0_i32 = arith.constant 0 : i32
    %c0_i32_0 = arith.constant 0 : i32
    %c0_i32_1 = arith.constant 0 : i32
    return %c0_i32, %c0_i32_0 : i32, i32
  }
  func.func @transform_2(%arg0: i32) -> (i32, i32) {
    %c0_i32 = arith.constant 0 : i32
    %c0_i32_0 = arith.constant 0 : i32
    %c0_i32_1 = arith.constant 0 : i32
    return %c0_i32, %c0_i32_0 : i32, i32
  }
  func.func @transform_3(%arg0: i32) -> (i32, i32) {
    %c0_i32 = arith.constant 0 : i32
    %c0_i32_0 = arith.constant 0 : i32
    %c0_i32_1 = arith.constant 0 : i32
    return %c0_i32, %c0_i32_0 : i32, i32
  }
  func.func @transform_4(%arg0: i32) -> (i32, i32) {
    %c0_i32 = arith.constant 0 : i32
    %c0_i32_0 = arith.constant 0 : i32
    %c0_i32_1 = arith.constant 0 : i32
    return %c0_i32, %c0_i32_0 : i32, i32
  }
  func.func @transform_5(%arg0: i32) -> (i32, i32) {
    %c0_i32 = arith.constant 0 : i32
    %c0_i32_0 = arith.constant 0 : i32
    %c0_i32_1 = arith.constant 0 : i32
    return %c0_i32, %c0_i32_0 : i32, i32
  }
  func.func @transform_6(%arg0: i32) -> (i32, i32) {
    %c0_i32 = arith.constant 0 : i32
    %c0_i32_0 = arith.constant 0 : i32
    %c0_i32_1 = arith.constant 0 : i32
    return %c0_i32, %c0_i32_0 : i32, i32
  }
}

</mosaic_0001>

<bundles_post_ra>
// kernel: mfgsn_forward.1
= control target key start
LH: loop header
LB: loop body
LE: loop exit
PB: predicated region body
PF: predicated region fallthrough
CT: control target
= control target key end

     0   :  { %11 = vsyncpa [#allocation3], 0  ;;  %s7059_s0 = inlined_call_operand.hbm [shape: f32[16,16], index: 0, kind: input, shape index: {}]   ;;  %s7060_s1 = inlined_call_operand.vmem [shape: f32[16,1728], index: 1, kind: input, shape index: {}]   ;;  %s7061_s2 = inlined_call_operand.vmem [shape: bf16[1728,512], index: 2, kind: input, shape index: {}]   ;;  %s7062_s3 = inlined_call_operand.vmem [shape: f32[1,512], index: 3, kind: input, shape index: {}]   ;;  %s7063_s4 = inlined_call_operand.vmem [shape: bf16[512,256], index: 4, kind: input, shape index: {}]   ;;  %s7064_s5 = inlined_call_operand.vmem [shape: f32[1,256], index: 5, kind: input, shape index: {}]   ;;  %s7065_s6 = inlined_call_operand.hbm [shape: f32[16,256], index: 6, kind: output, shape index: {}]  }
   0x1   :  { %12 = vsyncpa [#allocation4], 0  ;;  %s5314_s21 = smov [#allocation2]   ;;  %s5266_s25 = scalar_lea.hbm %s7059_s0, 256 }
   0x2   :  { %s18_s22 = sshll.u32 %s5314_s21, 4  ;;  %p5267_p0 = scmp.ne.s32.totalorder %s7059_s0, %s5266_s25  ;;  %s19_s22 = int_to_ptr.vmem [resolvable:$true] %s18_s22 }
   0x3   :  { %p5270_p1 = scmp.lt.u32.totalorder %s5266_s25, %s7059_s0 }
   0x5   :  { %p5272_p2 = pnand %p5270_p1, %p5267_p0 }
   0x7   :  { %5275 = shalt.err (!%p5272_p2)
}
   0x8   :  { %s5276_s30 = scalar_lea.vmem %s19_s22, 256  ;;  %p5281_p4 = scmp.lt.s32.totalorder %s19_s22, %s19_s22 }
   0x9   :  { %p5277_p3 = scmp.ne.s32.totalorder %s19_s22, %s5276_s30  ;;  %p5282_p5 = scmp.lt.s32.totalorder %s5276_s30, %s5276_s30 }
   0xb   :  { %p5283_p6 = por %p5282_p5, %p5281_p4 }
   0xd   :  { %p5284_p7 = pnand %p5283_p6, %p5277_p3 }
   0xf   :  { %5287 = shalt.err (!%p5284_p7)
}
  0x10   :  { %s5315_s7 = smov 128   ;;  %s5316_s8 = smov 8  }
  0x11   :  { %24 = dma.hbm_to_vmem [thread:$0]  %s7059_s0, 256, %s19_s22, [#allocation3], %s5315_s7, %s5315_s7, %s5316_s8  }
  0x12   :  { %5310 = dma.done.wait [#allocation3], 256  }
  0x13   :  { %5311 = vsyncadd [#allocation3], 4294967040  ;;  %v4522_v0 = vld [vmem:[%s7061_s2 + $0x4] ss:$16 sps:$4 sm:$0xff]   ;;  %v4526_v2 = vld [vmem:[%s7061_s2] ss:$16 sps:$4 sm:$0xff]  }
  0x14   :  { %v4524_v1 = vld [vmem:[%s7061_s2 + $0x204] ss:$16 sps:$4 sm:$0xff]   ;;  %2680 = vmatprep.subr.bf16.mxu1 %v4522_v0  ;;  %v4527_v3 = vld [vmem:[%s7061_s2 + $0x200] ss:$16 sps:$4 sm:$0xff]   ;;  %v43_v46 = vld [vmem:[%s7060_s1 + $0x8] sm:$0xff]  ;;  %vm2676_vm0 = vcmask 523264  }
  0x15   :  { %2723 = vmatprep.subr.bf16.mxu0 %v4524_v1  ;;  %v4528_v4 = vld [vmem:[%s7061_s2 + $0x24] ss:$16 sps:$4 sm:$0xff]   ;;  %2681 = vmatpush1.bf16.msra.mxu1 %v4526_v2  ;;  %v4532_v6 = vld [vmem:[%s7061_s2 + $0x20] ss:$16 sps:$4 sm:$0xff]   ;;  %v57_v49 = vld [vmem:[%s7060_s1 + $0x78] sm:$0xff]  ;;  %vm3308_vm1 = vcmask 130048  }
  0x16   :  { %2724 = vmatpush1.bf16.msra.mxu0 %v4527_v3  ;;  %v4530_v5 = vld [vmem:[%s7061_s2 + $0x224] ss:$16 sps:$4 sm:$0xff]   ;;  %2682 = vmatprep.subr.bf16.mxu1 %v4528_v4  ;;  %v4533_v7 = vld [vmem:[%s7061_s2 + $0x220] ss:$16 sps:$4 sm:$0xff]   ;;  %v5518_v50 = vpack.c.bf16 %v57_v49, %v43_v46  ;;  %v45_v51 = vld [vmem:[%s7060_s1 + $0x18] sm:$0xff]  ;;  %s5318_s0 = smov [#allocation5]  }
  0x17   :  { %2725 = vmatprep.subr.bf16.mxu0 %v4530_v5  ;;  %v4534_v8 = vld [vmem:[%s7061_s2 + $0x44] ss:$16 sps:$4 sm:$0xff]   ;;  %v4538_v10 = vld [vmem:[%s7061_s2 + $0x40] ss:$16 sps:$4 sm:$0xff]   ;;  %v59_v52 = vld [vmem:[%s7060_s1 + $0x88] sm:$0xff]  ;;  %s3950_s19 = sshll.u32 %s5318_s0, 4  ;;  %s3951_s19 = int_to_ptr.vmem [resolvable:$true] %s3950_s19 }
  0x18   :  { %v4536_v9 = vld [vmem:[%s7061_s2 + $0x244] ss:$16 sps:$4 sm:$0xff]   ;;  %v4539_v11 = vld [vmem:[%s7061_s2 + $0x240] ss:$16 sps:$4 sm:$0xff]   ;;  %v5532_v55 = vpack.c.bf16 %v59_v52, %v45_v51  ;;  %2712 = vmatprep.mubr.bf16.mxu1 %v5518_v50  ;;  %v4663_v46 = vld [vmem:[%s7061_s2 + $0xe8] ss:$16 sps:$4 sm:$0xff]   ;;  %p5293_p9 = scmp.lt.s32.totalorder %s3951_s19, %s3951_s19 }
  0x19   :  { %2683 = vmatpush1.bf16.msra.mxu1 %v4532_v6  ;;  %v4540_v12 = vld [vmem:[%s7061_s2 + $0x64] ss:$16 sps:$4 sm:$0xff]   ;;  %v4544_v14 = vld [vmem:[%s7061_s2 + $0x60] ss:$16 sps:$4 sm:$0xff]   ;;  %v4677_v52 = vld [vmem:[%s7061_s2 + $0x12c] ss:$16 sps:$4 sm:$0xff]  }
  0x1a   :  { %2726 = vmatpush1.bf16.msra.mxu0 %v4533_v7  ;;  %2684 = vmatprep.subr.bf16.mxu1 %v4534_v8  ;;  %v4542_v13 = vld [vmem:[%s7061_s2 + $0x264] ss:$16 sps:$4 sm:$0xff]   ;;  %v4545_v15 = vld [vmem:[%s7061_s2 + $0x260] ss:$16 sps:$4 sm:$0xff]  }
  0x1b   :  { %2727 = vmatprep.subr.bf16.mxu0 %v4536_v9  ;;  %v4546_v16 = vld [vmem:[%s7061_s2 + $0x84] ss:$16 sps:$4 sm:$0xff]   ;;  %v4550_v18 = vld [vmem:[%s7061_s2 + $0x80] ss:$16 sps:$4 sm:$0xff]   ;;  %2755 = vmatprep.mubr.bf16.mxu0 %v5532_v55 }
  0x1c   :  { %v4548_v17 = vld [vmem:[%s7061_s2 + $0x284] ss:$16 sps:$4 sm:$0xff]   ;;  %v4551_v19 = vld [vmem:[%s7061_s2 + $0x280] ss:$16 sps:$4 sm:$0xff]  }
  0x1d   :  { %2685 = vmatpush1.bf16.msra.mxu1 %v4538_v10  ;;  %v4552_v20 = vld [vmem:[%s7061_s2 + $0xa4] ss:$16 sps:$4 sm:$0xff]   ;;  %v4556_v22 = vld [vmem:[%s7061_s2 + $0xa0] ss:$16 sps:$4 sm:$0xff]  }
  0x1e   :  { %2728 = vmatpush1.bf16.msra.mxu0 %v4539_v11  ;;  %2686 = vmatprep.subr.bf16.mxu1 %v4540_v12  ;;  %v4554_v21 = vld [vmem:[%s7061_s2 + $0x2a4] ss:$16 sps:$4 sm:$0xff]   ;;  %v4557_v23 = vld [vmem:[%s7061_s2 + $0x2a0] ss:$16 sps:$4 sm:$0xff]   ;;  %v4623_v11 = vld [vmem:[%s7061_s2 + $0xc] ss:$16 sps:$4 sm:$0xff]  }
  0x1f   :  { %2729 = vmatprep.subr.bf16.mxu0 %v4542_v13  ;;  %v4558_v24 = vld [vmem:[%s7061_s2 + $0xc4] ss:$16 sps:$4 sm:$0xff]   ;;  %v4562_v26 = vld [vmem:[%s7061_s2 + $0xc0] ss:$16 sps:$4 sm:$0xff]  }
  0x20   :  { %v4560_v25 = vld [vmem:[%s7061_s2 + $0x2c4] ss:$16 sps:$4 sm:$0xff]   ;;  %v4563_v27 = vld [vmem:[%s7061_s2 + $0x2c0] ss:$16 sps:$4 sm:$0xff]  }
  0x21   :  { %2687 = vmatpush1.bf16.msra.mxu1 %v4544_v14  ;;  %v4564_v28 = vld [vmem:[%s7061_s2 + $0xe4] ss:$16 sps:$4 sm:$0xff]   ;;  %v4568_v30 = vld [vmem:[%s7061_s2 + $0xe0] ss:$16 sps:$4 sm:$0xff]   ;;  %v4621_v14 = vld [vmem:[%s7061_s2 + $0x8] ss:$16 sps:$4 sm:$0xff]  }
  0x22   :  { %2730 = vmatpush1.bf16.msra.mxu0 %v4545_v15  ;;  %2688 = vmatprep.subr.bf16.mxu1 %v4546_v16  ;;  %v4566_v29 = vld [vmem:[%s7061_s2 + $0x2e4] ss:$16 sps:$4 sm:$0xff]   ;;  %v4569_v31 = vld [vmem:[%s7061_s2 + $0x2e0] ss:$16 sps:$4 sm:$0xff]  }
  0x23   :  { %2731 = vmatprep.subr.bf16.mxu0 %v4548_v17  ;;  %v4570_v32 = vld [vmem:[%s7061_s2 + $0x104] ss:$16 sps:$4 sm:$0xff]   ;;  %v4574_v34 = vld [vmem:[%s7061_s2 + $0x100] ss:$16 sps:$4 sm:$0xff]   ;;  %v4629_v17 = vld [vmem:[%s7061_s2 + $0x2c] ss:$16 sps:$4 sm:$0xff]  }
  0x24   :  { %v4572_v33 = vld [vmem:[%s7061_s2 + $0x304] ss:$16 sps:$4 sm:$0xff]   ;;  %v4575_v35 = vld [vmem:[%s7061_s2 + $0x300] ss:$16 sps:$4 sm:$0xff]  }
  0x25   :  { %2689 = vmatpush1.bf16.msra.mxu1 %v4550_v18  ;;  %v4576_v36 = vld [vmem:[%s7061_s2 + $0x124] ss:$16 sps:$4 sm:$0xff]   ;;  %v4580_v38 = vld [vmem:[%s7061_s2 + $0x120] ss:$16 sps:$4 sm:$0xff]  }
  0x26   :  { %2732 = vmatpush1.bf16.msra.mxu0 %v4551_v19  ;;  %2690 = vmatprep.subr.bf16.mxu1 %v4552_v20  ;;  %v4578_v37 = vld [vmem:[%s7061_s2 + $0x324] ss:$16 sps:$4 sm:$0xff]   ;;  %v4581_v39 = vld [vmem:[%s7061_s2 + $0x320] ss:$16 sps:$4 sm:$0xff]   ;;  %v4627_v19 = vld [vmem:[%s7061_s2 + $0x28] ss:$16 sps:$4 sm:$0xff]  }
  0x27   :  { %2733 = vmatprep.subr.bf16.mxu0 %v4554_v21  ;;  %v4582_v40 = vld [vmem:[%s7061_s2 + $0x144] ss:$16 sps:$4 sm:$0xff]   ;;  %v4586_v42 = vld [vmem:[%s7061_s2 + $0x140] ss:$16 sps:$4 sm:$0xff]   ;;  %v4635_v21 = vld [vmem:[%s7061_s2 + $0x4c] ss:$16 sps:$4 sm:$0xff]  }
  0x28   :  { %v4584_v41 = vld [vmem:[%s7061_s2 + $0x344] ss:$16 sps:$4 sm:$0xff]   ;;  %v4587_v43 = vld [vmem:[%s7061_s2 + $0x340] ss:$16 sps:$4 sm:$0xff]  }
  0x29   :  { %2691 = vmatpush1.bf16.msra.mxu1 %v4556_v22  ;;  %v4588_v44 = vld [vmem:[%s7061_s2 + $0x164] ss:$16 sps:$4 sm:$0xff]   ;;  %v4592_v47 = vld [vmem:[%s7061_s2 + $0x160] ss:$16 sps:$4 sm:$0xff]  }
  0x2a   :  { %2734 = vmatpush1.bf16.msra.mxu0 %v4557_v23  ;;  %2692 = vmatprep.subr.bf16.mxu1 %v4558_v24  ;;  %v4590_v45 = vld [vmem:[%s7061_s2 + $0x364] ss:$16 sps:$4 sm:$0xff]   ;;  %v4593_v48 = vld [vmem:[%s7061_s2 + $0x360] ss:$16 sps:$4 sm:$0xff]   ;;  %v4633_v23 = vld [vmem:[%s7061_s2 + $0x48] ss:$16 sps:$4 sm:$0xff]  }
  0x2b   :  { %2735 = vmatprep.subr.bf16.mxu0 %v4560_v25  ;;  %v4594_v53 = vld [vmem:[%s7061_s2 + $0x184] ss:$16 sps:$4 sm:$0xff]   ;;  %v4598_v56 = vld [vmem:[%s7061_s2 + $0x180] ss:$16 sps:$4 sm:$0xff]   ;;  %v4641_v25 = vld [vmem:[%s7061_s2 + $0x6c] ss:$16 sps:$4 sm:$0xff]  }
  0x2c   :  { %v4596_v54 = vld [vmem:[%s7061_s2 + $0x384] ss:$16 sps:$4 sm:$0xff]   ;;  %v4599_v57 = vld [vmem:[%s7061_s2 + $0x380] ss:$16 sps:$4 sm:$0xff]  }
  0x2d   :  { %2693 = vmatpush1.bf16.msra.mxu1 %v4562_v26  ;;  %v4600_v58 = vld [vmem:[%s7061_s2 + $0x1a4] ss:$16 sps:$4 sm:$0xff]   ;;  %v4604_v60 = vld [vmem:[%s7061_s2 + $0x1a0] ss:$16 sps:$4 sm:$0xff]  }
  0x2e   :  { %2736 = vmatpush1.bf16.msra.mxu0 %v4563_v27  ;;  %2694 = vmatprep.subr.bf16.mxu1 %v4564_v28  ;;  %v4602_v59 = vld [vmem:[%s7061_s2 + $0x3a4] ss:$16 sps:$4 sm:$0xff]   ;;  %v4605_v61 = vld [vmem:[%s7061_s2 + $0x3a0] ss:$16 sps:$4 sm:$0xff]   ;;  %v4639_v27 = vld [vmem:[%s7061_s2 + $0x68] ss:$16 sps:$4 sm:$0xff]  }
  0x2f   :  { %2737 = vmatprep.subr.bf16.mxu0 %v4566_v29  ;;  %v4606_v62 = vld [vmem:[%s7061_s2 + $0x1c4] ss:$16 sps:$4 sm:$0xff]   ;;  %v4610_v0 = vld [vmem:[%s7061_s2 + $0x1c0] ss:$16 sps:$4 sm:$0xff]   ;;  %v4647_v29 = vld [vmem:[%s7061_s2 + $0x8c] ss:$16 sps:$4 sm:$0xff]  }
  0x30   :  { %v4608_v63 = vld [vmem:[%s7061_s2 + $0x3c4] ss:$16 sps:$4 sm:$0xff]   ;;  %v4611_v1 = vld [vmem:[%s7061_s2 + $0x3c0] ss:$16 sps:$4 sm:$0xff]  }
  0x31   :  { %2695 = vmatpush1.bf16.msra.mxu1 %v4568_v30  ;;  %v4612_v2 = vld [vmem:[%s7061_s2 + $0x1e4] ss:$16 sps:$4 sm:$0xff]   ;;  %v4616_v4 = vld [vmem:[%s7061_s2 + $0x1e0] ss:$16 sps:$4 sm:$0xff]  }
  0x32   :  { %2738 = vmatpush1.bf16.msra.mxu0 %v4569_v31  ;;  %2696 = vmatprep.subr.bf16.mxu1 %v4570_v32  ;;  %v4614_v3 = vld [vmem:[%s7061_s2 + $0x3e4] ss:$16 sps:$4 sm:$0xff]   ;;  %v4617_v5 = vld [vmem:[%s7061_s2 + $0x3e0] ss:$16 sps:$4 sm:$0xff]   ;;  %v4645_v31 = vld [vmem:[%s7061_s2 + $0x88] ss:$16 sps:$4 sm:$0xff]  }
  0x33   :  { %2739 = vmatprep.subr.bf16.mxu0 %v4572_v33  ;;  %v42_v6 = vld [vmem:[%s7060_s1] sm:$0xff]  ;;  %v56_v7 = vld [vmem:[%s7060_s1 + $0x70] sm:$0xff]  ;;  %v4653_v33 = vld [vmem:[%s7061_s2 + $0xac] ss:$16 sps:$4 sm:$0xff]  }
  0x34   :  { %v4620_v8 = vld [vmem:[%s7061_s2 + $0x404] ss:$16 sps:$4 sm:$0xff]   ;;  %v5596_v12 = vpack.c.bf16 %v56_v7, %v42_v6  ;;  %v4618_v13 = vld [vmem:[%s7061_s2 + $0x400] ss:$16 sps:$4 sm:$0xff]   ;;  %v4699_v7 = vld [vmem:[%s7061_s2 + $0x1a8] ss:$16 sps:$4 sm:$0xff]  }
  0x35   :  { %2697 = vmatpush1.bf16.msra.mxu1 %v4574_v34  ;;  %v44_v9 = vld [vmem:[%s7060_s1 + $0x10] sm:$0xff]  ;;  %v58_v10 = vld [vmem:[%s7060_s1 + $0x80] sm:$0xff] }
  0x36   :  { %2740 = vmatpush1.bf16.msra.mxu0 %v4575_v35  ;;  %2698 = vmatprep.subr.bf16.mxu1 %v4576_v36  ;;  %v5604_v15 = vpack.c.bf16 %v58_v10, %v44_v9  ;;  %v4626_v16 = vld [vmem:[%s7061_s2 + $0x424] ss:$16 sps:$4 sm:$0xff]   ;;  %v4624_v18 = vld [vmem:[%s7061_s2 + $0x420] ss:$16 sps:$4 sm:$0xff]   ;;  %v4651_v35 = vld [vmem:[%s7061_s2 + $0xa8] ss:$16 sps:$4 sm:$0xff]  }
  0x37   :  { %2741 = vmatprep.subr.bf16.mxu0 %v4578_v37  ;;  %v4632_v20 = vld [vmem:[%s7061_s2 + $0x444] ss:$16 sps:$4 sm:$0xff]   ;;  %v4630_v22 = vld [vmem:[%s7061_s2 + $0x440] ss:$16 sps:$4 sm:$0xff]   ;;  %v4659_v37 = vld [vmem:[%s7061_s2 + $0xcc] ss:$16 sps:$4 sm:$0xff]  }
  0x38   :  { %v4638_v24 = vld [vmem:[%s7061_s2 + $0x464] ss:$16 sps:$4 sm:$0xff]   ;;  %v4636_v26 = vld [vmem:[%s7061_s2 + $0x460] ss:$16 sps:$4 sm:$0xff]   ;;  %v4707_v9 = vld [vmem:[%s7061_s2 + $0x1cc] ss:$16 sps:$4 sm:$0xff]  }
  0x39   :  { %2699 = vmatpush1.bf16.msra.mxu1 %v4580_v38  ;;  %v4644_v28 = vld [vmem:[%s7061_s2 + $0x484] ss:$16 sps:$4 sm:$0xff]   ;;  %v4642_v30 = vld [vmem:[%s7061_s2 + $0x480] ss:$16 sps:$4 sm:$0xff]  }
  0x3a   :  { %2742 = vmatpush1.bf16.msra.mxu0 %v4581_v39  ;;  %2700 = vmatprep.subr.bf16.mxu1 %v4582_v40  ;;  %v4650_v32 = vld [vmem:[%s7061_s2 + $0x4a4] ss:$16 sps:$4 sm:$0xff]   ;;  %v4648_v34 = vld [vmem:[%s7061_s2 + $0x4a0] ss:$16 sps:$4 sm:$0xff]   ;;  %v4657_v39 = vld [vmem:[%s7061_s2 + $0xc8] ss:$16 sps:$4 sm:$0xff]  }
  0x3b   :  { %2743 = vmatprep.subr.bf16.mxu0 %v4584_v41  ;;  %v4656_v36 = vld [vmem:[%s7061_s2 + $0x4c4] ss:$16 sps:$4 sm:$0xff]   ;;  %v4654_v38 = vld [vmem:[%s7061_s2 + $0x4c0] ss:$16 sps:$4 sm:$0xff]   ;;  %v47_v40 = vld [vmem:[%s7060_s1 + $0x28] sm:$0xff] }
  0x3c   :  { %v61_v41 = vld [vmem:[%s7060_s1 + $0x98] sm:$0xff]  ;;  %v4666_v49 = vld [vmem:[%s7061_s2 + $0x500] ss:$16 sps:$4 sm:$0xff]   ;;  %v4674_v51 = vld [vmem:[%s7061_s2 + $0x524] ss:$16 sps:$4 sm:$0xff]  }
  0x3d   :  { %2701 = vmatpush1.bf16.msra.mxu1 %v4586_v42  ;;  %v4662_v42 = vld [vmem:[%s7061_s2 + $0x4e4] ss:$16 sps:$4 sm:$0xff]   ;;  %v4696_v6 = vld [vmem:[%s7061_s2 + $0x5a0] ss:$16 sps:$4 sm:$0xff]  }
  0x3e   :  { %2744 = vmatpush1.bf16.msra.mxu0 %v4587_v43  ;;  %2702 = vmatprep.subr.bf16.mxu1 %v4588_v44  ;;  %v4665_v43 = vld [vmem:[%s7061_s2 + $0xec] ss:$16 sps:$4 sm:$0xff]   ;;  %v5693_v44 = vpack.c.bf16 %v61_v41, %v47_v40  ;;  %v4702_v10 = vld [vmem:[%s7061_s2 + $0x5c0] ss:$16 sps:$4 sm:$0xff]   ;;  %v4741_v41 = vld [vmem:[%s7061_s2 + $0x288] ss:$16 sps:$4 sm:$0xff]  }
  0x3f   :  { %2745 = vmatprep.subr.bf16.mxu0 %v4590_v45  ;;  %v4660_v45 = vld [vmem:[%s7061_s2 + $0x4e0] ss:$16 sps:$4 sm:$0xff]  }
  0x40   :  { %v4738_v40 = vld [vmem:[%s7061_s2 + $0x680] ss:$16 sps:$4 sm:$0xff]  }
  0x41   :  { %2703 = vmatpush1.bf16.msra.mxu1 %v4592_v47  ;;  %v4668_v47 = vld [vmem:[%s7061_s2 + $0x504] ss:$16 sps:$4 sm:$0xff]  }
  0x42   :  { %2746 = vmatpush1.bf16.msra.mxu0 %v4593_v48  ;;  %2704 = vmatprep.subr.bf16.mxu1 %v4594_v53  ;;  %v4671_v48 = vld [vmem:[%s7061_s2 + $0x10c] ss:$16 sps:$4 sm:$0xff]   ;;  %v4672_v53 = vld [vmem:[%s7061_s2 + $0x520] ss:$16 sps:$4 sm:$0xff]  }
  0x43   :  { %2747 = vmatprep.subr.bf16.mxu0 %v4596_v54  ;;  %v4675_v54 = vld [vmem:[%s7061_s2 + $0x128] ss:$16 sps:$4 sm:$0xff]  }
  0x45   :  { %2705 = vmatpush1.bf16.msra.mxu1 %v4598_v56  ;;  %v4680_v56 = vld [vmem:[%s7061_s2 + $0x544] ss:$16 sps:$4 sm:$0xff]  }
  0x46   :  { %2748 = vmatpush1.bf16.msra.mxu0 %v4599_v57  ;;  %2706 = vmatprep.subr.bf16.mxu1 %v4600_v58  ;;  %v4683_v57 = vld [vmem:[%s7061_s2 + $0x14c] ss:$16 sps:$4 sm:$0xff]   ;;  %v4678_v58 = vld [vmem:[%s7061_s2 + $0x540] ss:$16 sps:$4 sm:$0xff]  }
  0x47   :  { %2749 = vmatprep.subr.bf16.mxu0 %v4602_v59  ;;  %v4681_v59 = vld [vmem:[%s7061_s2 + $0x148] ss:$16 sps:$4 sm:$0xff]  }
  0x49   :  { %2707 = vmatpush1.bf16.msra.mxu1 %v4604_v60  ;;  %v4686_v60 = vld [vmem:[%s7061_s2 + $0x564] ss:$16 sps:$4 sm:$0xff]  }
  0x4a   :  { %2750 = vmatpush1.bf16.msra.mxu0 %v4605_v61  ;;  %2708 = vmatprep.subr.bf16.mxu1 %v4606_v62  ;;  %v4689_v61 = vld [vmem:[%s7061_s2 + $0x16c] ss:$16 sps:$4 sm:$0xff]   ;;  %v4684_v62 = vld [vmem:[%s7061_s2 + $0x560] ss:$16 sps:$4 sm:$0xff]  }
  0x4b   :  { %2751 = vmatprep.subr.bf16.mxu0 %v4608_v63  ;;  %v4687_v63 = vld [vmem:[%s7061_s2 + $0x168] ss:$16 sps:$4 sm:$0xff]  }
  0x4d   :  { %2709 = vmatpush1.bf16.msra.mxu1 %v4610_v0  ;;  %v4692_v0 = vld [vmem:[%s7061_s2 + $0x584] ss:$16 sps:$4 sm:$0xff]  }
  0x4e   :  { %2752 = vmatpush1.bf16.msra.mxu0 %v4611_v1  ;;  %2710 = vmatprep.subr.bf16.mxu1 %v4612_v2  ;;  %v4695_v1 = vld [vmem:[%s7061_s2 + $0x18c] ss:$16 sps:$4 sm:$0xff]   ;;  %v4690_v2 = vld [vmem:[%s7061_s2 + $0x580] ss:$16 sps:$4 sm:$0xff]  }
  0x4f   :  { %2753 = vmatprep.subr.bf16.mxu0 %v4614_v3  ;;  %v4693_v3 = vld [vmem:[%s7061_s2 + $0x188] ss:$16 sps:$4 sm:$0xff]  }
  0x51   :  { %2711 = vmatpush1.bf16.msra.mxu1 %v4616_v4  ;;  %v4698_v4 = vld [vmem:[%s7061_s2 + $0x5a4] ss:$16 sps:$4 sm:$0xff]  }
  0x52   :  { %2754 = vmatpush1.bf16.msra.mxu0 %v4617_v5  ;;  %2981 = vmatprep.subr.bf16.mxu1 %v4623_v11  ;;  %v4701_v5 = vld [vmem:[%s7061_s2 + $0x1ac] ss:$16 sps:$4 sm:$0xff]   ;;  %v4705_v11 = vld [vmem:[%s7061_s2 + $0x1c8] ss:$16 sps:$4 sm:$0xff]  }
  0x53   :  { %2766 = vmatprep.subr.bf16.mxu0 %v4620_v8  ;;  %v4704_v8 = vld [vmem:[%s7061_s2 + $0x5c4] ss:$16 sps:$4 sm:$0xff]  }
  0x54   :  { %2713 = vmatmul.mubr.bf16.vlgmr.msra.gmra.mrb[0].mxu1 %v5596_v12 }
  0x55   :  { %2756 = vmatmul.mubr.bf16.vlgmr.msra.gmra.mrb[0].mxu0 %v5604_v15  ;;  %2982 = vmatpush1.bf16.msra.mxu1 %v4621_v14  ;;  %v4713_v14 = vld [vmem:[%s7061_s2 + $0x1ec] ss:$16 sps:$4 sm:$0xff]  }
  0x56   :  { %2767 = vmatpush1.bf16.msra.mxu0 %v4618_v13  ;;  %2983 = vmatprep.subr.bf16.mxu1 %v4629_v17  ;;  %v4710_v13 = vld [vmem:[%s7061_s2 + $0x5e4] ss:$16 sps:$4 sm:$0xff]   ;;  %v4711_v17 = vld [vmem:[%s7061_s2 + $0x1e8] ss:$16 sps:$4 sm:$0xff]  }
  0x57   :  { %2768 = vmatprep.subr.bf16.mxu0 %v4626_v16  ;;  %3013 = vmatprep.mubr.bf16.mxu1 %v5518_v50  ;;  %v4669_v50 = vld [vmem:[%s7061_s2 + $0x108] ss:$16 sps:$4 sm:$0xff]   ;;  %v4708_v16 = vld [vmem:[%s7061_s2 + $0x5e0] ss:$16 sps:$4 sm:$0xff]  }
  0x58   :  { %2798 = vmatprep.mubr.bf16.mxu0 %v5693_v44 }
  0x59   :  { %2984 = vmatpush1.bf16.msra.mxu1 %v4627_v19  ;;  %v46_v19 = vld [vmem:[%s7060_s1 + $0x20] sm:$0xff] }
  0x5a   :  { %2769 = vmatpush1.bf16.msra.mxu0 %v4624_v18  ;;  %2985 = vmatprep.subr.bf16.mxu1 %v4635_v21  ;;  %v4716_v18 = vld [vmem:[%s7061_s2 + $0x604] ss:$16 sps:$4 sm:$0xff]   ;;  %v4719_v21 = vld [vmem:[%s7061_s2 + $0x20c] ss:$16 sps:$4 sm:$0xff]  }
  0x5b   :  { %2770 = vmatprep.subr.bf16.mxu0 %v4632_v20  ;;  %v60_v20 = vld [vmem:[%s7060_s1 + $0x90] sm:$0xff] }
  0x5d   :  { %2986 = vmatpush1.bf16.msra.mxu1 %v4633_v23  ;;  %v4717_v23 = vld [vmem:[%s7061_s2 + $0x208] ss:$16 sps:$4 sm:$0xff]  }
  0x5e   :  { %2771 = vmatpush1.bf16.msra.mxu0 %v4630_v22  ;;  %2987 = vmatprep.subr.bf16.mxu1 %v4641_v25  ;;  %v4714_v22 = vld [vmem:[%s7061_s2 + $0x600] ss:$16 sps:$4 sm:$0xff]   ;;  %v4722_v25 = vld [vmem:[%s7061_s2 + $0x624] ss:$16 sps:$4 sm:$0xff]  }
  0x5f   :  { %2772 = vmatprep.subr.bf16.mxu0 %v4638_v24  ;;  %v5816_v24 = vpack.c.bf16 %v60_v20, %v46_v19  ;;  %v4803_v19 = vld [vmem:[%s7061_s2 + $0x3cc] ss:$16 sps:$4 sm:$0xff]   ;;  %v4798_v20 = vld [vmem:[%s7061_s2 + $0x7c0] ss:$16 sps:$4 sm:$0xff]  }
  0x61   :  { %2988 = vmatpush1.bf16.msra.mxu1 %v4639_v27  ;;  %v4720_v27 = vld [vmem:[%s7061_s2 + $0x620] ss:$16 sps:$4 sm:$0xff]  }
  0x62   :  { %2773 = vmatpush1.bf16.msra.mxu0 %v4636_v26  ;;  %2989 = vmatprep.subr.bf16.mxu1 %v4647_v29  ;;  %v4725_v26 = vld [vmem:[%s7061_s2 + $0x22c] ss:$16 sps:$4 sm:$0xff]  }
  0x63   :  { %2774 = vmatprep.subr.bf16.mxu0 %v4644_v28  ;;  %v4723_v28 = vld [vmem:[%s7061_s2 + $0x228] ss:$16 sps:$4 sm:$0xff]  }
  0x64   :  { %v49_v29 = vld [vmem:[%s7060_s1 + $0x38] sm:$0xff] }
  0x65   :  { %2990 = vmatpush1.bf16.msra.mxu1 %v4645_v31  ;;  %v4731_v31 = vld [vmem:[%s7061_s2 + $0x24c] ss:$16 sps:$4 sm:$0xff]  }
  0x66   :  { %2775 = vmatpush1.bf16.msra.mxu0 %v4642_v30  ;;  %2991 = vmatprep.subr.bf16.mxu1 %v4653_v33  ;;  %v63_v30 = vld [vmem:[%s7060_s1 + $0xa8] sm:$0xff]  ;;  %v4726_v33 = vld [vmem:[%s7061_s2 + $0x640] ss:$16 sps:$4 sm:$0xff]  }
  0x67   :  { %2776 = vmatprep.subr.bf16.mxu0 %v4650_v32  ;;  %v5844_v32 = vpack.c.bf16 %v63_v30, %v49_v29  ;;  %v62_v29 = vld [vmem:[%s7060_s1 + $0xa0] sm:$0xff]  ;;  %v4815_v30 = vld [vmem:[%s7061_s2 + $0x40c] ss:$16 sps:$4 sm:$0xff]  }
  0x69   :  { %2992 = vmatpush1.bf16.msra.mxu1 %v4651_v35  ;;  %v4734_v35 = vld [vmem:[%s7061_s2 + $0x664] ss:$16 sps:$4 sm:$0xff]  }
  0x6a   :  { %2777 = vmatpush1.bf16.msra.mxu0 %v4648_v34  ;;  %2993 = vmatprep.subr.bf16.mxu1 %v4659_v37  ;;  %v4729_v34 = vld [vmem:[%s7061_s2 + $0x248] ss:$16 sps:$4 sm:$0xff]  }
  0x6b   :  { %2778 = vmatprep.subr.bf16.mxu0 %v4656_v36  ;;  %v4732_v36 = vld [vmem:[%s7061_s2 + $0x660] ss:$16 sps:$4 sm:$0xff]   ;;  %v4735_v37 = vld [vmem:[%s7061_s2 + $0x268] ss:$16 sps:$4 sm:$0xff]  }
  0x6d   :  { %2994 = vmatpush1.bf16.msra.mxu1 %v4657_v39  ;;  %v4743_v39 = vld [vmem:[%s7061_s2 + $0x28c] ss:$16 sps:$4 sm:$0xff]  }
  0x6e   :  { %2779 = vmatpush1.bf16.msra.mxu0 %v4654_v38  ;;  %2995 = vmatprep.subr.bf16.mxu1 %v4665_v43  ;;  %v4740_v38 = vld [vmem:[%s7061_s2 + $0x684] ss:$16 sps:$4 sm:$0xff]   ;;  %v4749_v43 = vld [vmem:[%s7061_s2 + $0x2ac] ss:$16 sps:$4 sm:$0xff]  }
  0x6f   :  { %2780 = vmatprep.subr.bf16.mxu0 %v4662_v42  ;;  %v4746_v42 = vld [vmem:[%s7061_s2 + $0x6a4] ss:$16 sps:$4 sm:$0xff]  }
  0x71   :  { %2996 = vmatpush1.bf16.msra.mxu1 %v4663_v46  ;;  %v4747_v46 = vld [vmem:[%s7061_s2 + $0x2a8] ss:$16 sps:$4 sm:$0xff]  }
  0x72   :  { %2781 = vmatpush1.bf16.msra.mxu0 %v4660_v45  ;;  %2997 = vmatprep.subr.bf16.mxu1 %v4671_v48  ;;  %v4744_v45 = vld [vmem:[%s7061_s2 + $0x6a0] ss:$16 sps:$4 sm:$0xff]   ;;  %v4755_v48 = vld [vmem:[%s7061_s2 + $0x2cc] ss:$16 sps:$4 sm:$0xff]  }
  0x73   :  { %2782 = vmatprep.subr.bf16.mxu0 %v4668_v47  ;;  %v4752_v47 = vld [vmem:[%s7061_s2 + $0x6c4] ss:$16 sps:$4 sm:$0xff]  }
  0x75   :  { %2998 = vmatpush1.bf16.msra.mxu1 %v4669_v50  ;;  %v4753_v50 = vld [vmem:[%s7061_s2 + $0x2c8] ss:$16 sps:$4 sm:$0xff]  }
  0x76   :  { %2783 = vmatpush1.bf16.msra.mxu0 %v4666_v49  ;;  %2999 = vmatprep.subr.bf16.mxu1 %v4677_v52  ;;  %v4750_v49 = vld [vmem:[%s7061_s2 + $0x6c0] ss:$16 sps:$4 sm:$0xff]   ;;  %v4761_v52 = vld [vmem:[%s7061_s2 + $0x2ec] ss:$16 sps:$4 sm:$0xff]  }
  0x77   :  { %2784 = vmatprep.subr.bf16.mxu0 %v4674_v51  ;;  %v4758_v51 = vld [vmem:[%s7061_s2 + $0x6e4] ss:$16 sps:$4 sm:$0xff]  }
  0x79   :  { %3000 = vmatpush1.bf16.msra.mxu1 %v4675_v54  ;;  %v4759_v54 = vld [vmem:[%s7061_s2 + $0x2e8] ss:$16 sps:$4 sm:$0xff]  }
  0x7a   :  { %2785 = vmatpush1.bf16.msra.mxu0 %v4672_v53  ;;  %3001 = vmatprep.subr.bf16.mxu1 %v4683_v57  ;;  %v4756_v53 = vld [vmem:[%s7061_s2 + $0x6e0] ss:$16 sps:$4 sm:$0xff]   ;;  %v4767_v57 = vld [vmem:[%s7061_s2 + $0x30c] ss:$16 sps:$4 sm:$0xff]  }
  0x7b   :  { %2786 = vmatprep.subr.bf16.mxu0 %v4680_v56  ;;  %v4764_v56 = vld [vmem:[%s7061_s2 + $0x704] ss:$16 sps:$4 sm:$0xff]  }
  0x7d   :  { %3002 = vmatpush1.bf16.msra.mxu1 %v4681_v59  ;;  %v4765_v59 = vld [vmem:[%s7061_s2 + $0x308] ss:$16 sps:$4 sm:$0xff]  }
  0x7e   :  { %2787 = vmatpush1.bf16.msra.mxu0 %v4678_v58  ;;  %3003 = vmatprep.subr.bf16.mxu1 %v4689_v61  ;;  %v4762_v58 = vld [vmem:[%s7061_s2 + $0x700] ss:$16 sps:$4 sm:$0xff]   ;;  %v4773_v61 = vld [vmem:[%s7061_s2 + $0x32c] ss:$16 sps:$4 sm:$0xff]  }
  0x7f   :  { %2788 = vmatprep.subr.bf16.mxu0 %v4686_v60  ;;  %v4770_v60 = vld [vmem:[%s7061_s2 + $0x724] ss:$16 sps:$4 sm:$0xff]  }
  0x81   :  { %3004 = vmatpush1.bf16.msra.mxu1 %v4687_v63  ;;  %v4771_v63 = vld [vmem:[%s7061_s2 + $0x328] ss:$16 sps:$4 sm:$0xff]  }
  0x82   :  { %2789 = vmatpush1.bf16.msra.mxu0 %v4684_v62  ;;  %3005 = vmatprep.subr.bf16.mxu1 %v4695_v1  ;;  %v4768_v62 = vld [vmem:[%s7061_s2 + $0x720] ss:$16 sps:$4 sm:$0xff]   ;;  %v4779_v1 = vld [vmem:[%s7061_s2 + $0x34c] ss:$16 sps:$4 sm:$0xff]  }
  0x83   :  { %2790 = vmatprep.subr.bf16.mxu0 %v4692_v0  ;;  %v4776_v0 = vld [vmem:[%s7061_s2 + $0x744] ss:$16 sps:$4 sm:$0xff]  }
  0x85   :  { %3006 = vmatpush1.bf16.msra.mxu1 %v4693_v3  ;;  %v4777_v3 = vld [vmem:[%s7061_s2 + $0x348] ss:$16 sps:$4 sm:$0xff]  }
  0x86   :  { %2791 = vmatpush1.bf16.msra.mxu0 %v4690_v2  ;;  %3007 = vmatprep.subr.bf16.mxu1 %v4701_v5  ;;  %v4774_v2 = vld [vmem:[%s7061_s2 + $0x740] ss:$16 sps:$4 sm:$0xff]   ;;  %v4785_v5 = vld [vmem:[%s7061_s2 + $0x36c] ss:$16 sps:$4 sm:$0xff]  }
  0x87   :  { %2792 = vmatprep.subr.bf16.mxu0 %v4698_v4  ;;  %v4782_v4 = vld [vmem:[%s7061_s2 + $0x764] ss:$16 sps:$4 sm:$0xff]  }
  0x89   :  { %3008 = vmatpush1.bf16.msra.mxu1 %v4699_v7  ;;  %v4783_v7 = vld [vmem:[%s7061_s2 + $0x368] ss:$16 sps:$4 sm:$0xff]  }
  0x8a   :  { %2793 = vmatpush1.bf16.msra.mxu0 %v4696_v6  ;;  %3009 = vmatprep.subr.bf16.mxu1 %v4707_v9  ;;  %v4780_v6 = vld [vmem:[%s7061_s2 + $0x760] ss:$16 sps:$4 sm:$0xff]   ;;  %v4791_v9 = vld [vmem:[%s7061_s2 + $0x38c] ss:$16 sps:$4 sm:$0xff]  }
  0x8b   :  { %2794 = vmatprep.subr.bf16.mxu0 %v4704_v8  ;;  %v4788_v8 = vld [vmem:[%s7061_s2 + $0x784] ss:$16 sps:$4 sm:$0xff]  }
  0x8d   :  { %3010 = vmatpush1.bf16.msra.mxu1 %v4705_v11  ;;  %v4789_v11 = vld [vmem:[%s7061_s2 + $0x388] ss:$16 sps:$4 sm:$0xff]  }
  0x8e   :  { %2795 = vmatpush1.bf16.msra.mxu0 %v4702_v10  ;;  %3011 = vmatprep.subr.bf16.mxu1 %v4713_v14  ;;  %v4786_v10 = vld [vmem:[%s7061_s2 + $0x780] ss:$16 sps:$4 sm:$0xff]   ;;  %v4797_v14 = vld [vmem:[%s7061_s2 + $0x3ac] ss:$16 sps:$4 sm:$0xff]  }
  0x8f   :  { %2796 = vmatprep.subr.bf16.mxu0 %v4710_v13  ;;  %v4794_v13 = vld [vmem:[%s7061_s2 + $0x7a4] ss:$16 sps:$4 sm:$0xff]  }
  0x91   :  { %3012 = vmatpush1.bf16.msra.mxu1 %v4711_v17  ;;  %v4795_v17 = vld [vmem:[%s7061_s2 + $0x3a8] ss:$16 sps:$4 sm:$0xff]  }
  0x92   :  { %2797 = vmatpush1.bf16.msra.mxu0 %v4708_v16  ;;  %3024 = vmatprep.subr.bf16.mxu1 %v4719_v21  ;;  %v4792_v16 = vld [vmem:[%s7061_s2 + $0x7a0] ss:$16 sps:$4 sm:$0xff]   ;;  %v4801_v21 = vld [vmem:[%s7061_s2 + $0x3c8] ss:$16 sps:$4 sm:$0xff]  }
  0x93   :  { %2809 = vmatprep.subr.bf16.mxu0 %v4716_v18  ;;  %v4800_v18 = vld [vmem:[%s7061_s2 + $0x7c4] ss:$16 sps:$4 sm:$0xff]  }
  0x94   :  { %3014 = vmatmul.mubr.bf16.vlgmr.msra.gmra.mrb[4].mxu1 %v5596_v12  ;;  %v4728_v12 = vld [vmem:[%s7061_s2 + $0x644] ss:$16 sps:$4 sm:$0xff]  }
  0x95   :  { %2799 = vmatmul.mubr.bf16.vlgmr.msra.gmra.mrb[0].mxu0 %v5816_v24  ;;  %3025 = vmatpush1.bf16.msra.mxu1 %v4717_v23  ;;  %v4809_v23 = vld [vmem:[%s7061_s2 + $0x3ec] ss:$16 sps:$4 sm:$0xff]  }
  0x96   :  { %2810 = vmatpush1.bf16.msra.mxu0 %v4714_v22  ;;  %3026 = vmatprep.subr.bf16.mxu1 %v4725_v26  ;;  %v4806_v22 = vld [vmem:[%s7061_s2 + $0x7e4] ss:$16 sps:$4 sm:$0xff]   ;;  %v4807_v26 = vld [vmem:[%s7061_s2 + $0x3e8] ss:$16 sps:$4 sm:$0xff]  }
  0x97   :  { %2811 = vmatprep.subr.bf16.mxu0 %v4722_v25  ;;  %3056 = vmatprep.mubr.bf16.mxu1 %v5532_v55  ;;  %v4737_v55 = vld [vmem:[%s7061_s2 + $0x26c] ss:$16 sps:$4 sm:$0xff]   ;;  %v4804_v25 = vld [vmem:[%s7061_s2 + $0x7e0] ss:$16 sps:$4 sm:$0xff]  }
  0x98   :  { %2841 = vmatprep.mubr.bf16.mxu0 %v5844_v32 }
  0x99   :  { %3027 = vmatpush1.bf16.msra.mxu1 %v4723_v28  ;;  %v48_v28 = vld [vmem:[%s7060_s1 + $0x30] sm:$0xff] }
  0x9a   :  { %2812 = vmatpush1.bf16.msra.mxu0 %v4720_v27  ;;  %3028 = vmatprep.subr.bf16.mxu1 %v4731_v31  ;;  %v4812_v27 = vld [vmem:[%s7061_s2 + $0x804] ss:$16 sps:$4 sm:$0xff]   ;;  %v4813_v31 = vld [vmem:[%s7061_s2 + $0x408] ss:$16 sps:$4 sm:$0xff]  }
  0x9b   :  { %2813 = vmatprep.subr.bf16.mxu0 %v4728_v12  ;;  %v4810_v12 = vld [vmem:[%s7061_s2 + $0x800] ss:$16 sps:$4 sm:$0xff]  }
  0x9d   :  { %3029 = vmatpush1.bf16.msra.mxu1 %v4729_v34  ;;  %v51_v34 = vld [vmem:[%s7060_s1 + $0x48] sm:$0xff] }
  0x9e   :  { %2814 = vmatpush1.bf16.msra.mxu0 %v4726_v33  ;;  %3030 = vmatprep.subr.bf16.mxu1 %v4737_v55  ;;  %v6028_v33 = vpack.c.bf16 %v62_v29, %v48_v28  ;;  %v4818_v55 = vld [vmem:[%s7061_s2 + $0x824] ss:$16 sps:$4 sm:$0xff]   ;;  %v4899_v28 = vld [vmem:[%s7061_s2 + $0x5cc] ss:$16 sps:$4 sm:$0xff]   ;;  %v4894_v29 = vld [vmem:[%s7061_s2 + $0x9c0] ss:$16 sps:$4 sm:$0xff]  }
  0x9f   :  { %2815 = vmatprep.subr.bf16.mxu0 %v4734_v35  ;;  %v65_v35 = vld [vmem:[%s7060_s1 + $0xb8] sm:$0xff] }
  0xa1   :  { %3031 = vmatpush1.bf16.msra.mxu1 %v4735_v37  ;;  %v6042_v37 = vpack.c.bf16 %v65_v35, %v51_v34  ;;  %v4900_v34 = vld [vmem:[%s7061_s2 + $0x9e0] ss:$16 sps:$4 sm:$0xff]   ;;  %v4903_v35 = vld [vmem:[%s7061_s2 + $0x5e8] ss:$16 sps:$4 sm:$0xff]  }
  0xa2   :  { %2816 = vmatpush1.bf16.msra.mxu0 %v4732_v36  ;;  %3032 = vmatprep.subr.bf16.mxu1 %v4743_v39  ;;  %v4821_v36 = vld [vmem:[%s7061_s2 + $0x42c] ss:$16 sps:$4 sm:$0xff]   ;;  %v4819_v39 = vld [vmem:[%s7061_s2 + $0x428] ss:$16 sps:$4 sm:$0xff]  }
  0xa3   :  { %2817 = vmatprep.subr.bf16.mxu0 %v4740_v38  ;;  %v4816_v38 = vld [vmem:[%s7061_s2 + $0x820] ss:$16 sps:$4 sm:$0xff]  }
  0xa5   :  { %3033 = vmatpush1.bf16.msra.mxu1 %v4741_v41  ;;  %v4822_v41 = vld [vmem:[%s7061_s2 + $0x840] ss:$16 sps:$4 sm:$0xff]  }
  0xa6   :  { %2818 = vmatpush1.bf16.msra.mxu0 %v4738_v40  ;;  %3034 = vmatprep.subr.bf16.mxu1 %v4749_v43  ;;  %v4824_v40 = vld [vmem:[%s7061_s2 + $0x844] ss:$16 sps:$4 sm:$0xff]  }
  0xa7   :  { %2819 = vmatprep.subr.bf16.mxu0 %v4746_v42  ;;  %v4825_v42 = vld [vmem:[%s7061_s2 + $0x448] ss:$16 sps:$4 sm:$0xff]   ;;  %v4830_v43 = vld [vmem:[%s7061_s2 + $0x864] ss:$16 sps:$4 sm:$0xff]  }
  0xa9   :  { %3035 = vmatpush1.bf16.msra.mxu1 %v4747_v46  ;;  %v4831_v46 = vld [vmem:[%s7061_s2 + $0x468] ss:$16 sps:$4 sm:$0xff]  }
  0xaa   :  { %2820 = vmatpush1.bf16.msra.mxu0 %v4744_v45  ;;  %3036 = vmatprep.subr.bf16.mxu1 %v4755_v48  ;;  %v4828_v45 = vld [vmem:[%s7061_s2 + $0x860] ss:$16 sps:$4 sm:$0xff]   ;;  %v4839_v48 = vld [vmem:[%s7061_s2 + $0x48c] ss:$16 sps:$4 sm:$0xff]  }
  0xab   :  { %2821 = vmatprep.subr.bf16.mxu0 %v4752_v47  ;;  %v4836_v47 = vld [vmem:[%s7061_s2 + $0x884] ss:$16 sps:$4 sm:$0xff]  }
  0xad   :  { %3037 = vmatpush1.bf16.msra.mxu1 %v4753_v50  ;;  %v4837_v50 = vld [vmem:[%s7061_s2 + $0x488] ss:$16 sps:$4 sm:$0xff]  }
  0xae   :  { %2822 = vmatpush1.bf16.msra.mxu0 %v4750_v49  ;;  %3038 = vmatprep.subr.bf16.mxu1 %v4761_v52  ;;  %v4834_v49 = vld [vmem:[%s7061_s2 + $0x880] ss:$16 sps:$4 sm:$0xff]   ;;  %v4845_v52 = vld [vmem:[%s7061_s2 + $0x4ac] ss:$16 sps:$4 sm:$0xff]  }
  0xaf   :  { %2823 = vmatprep.subr.bf16.mxu0 %v4758_v51  ;;  %v4842_v51 = vld [vmem:[%s7061_s2 + $0x8a4] ss:$16 sps:$4 sm:$0xff]  }
  0xb1   :  { %3039 = vmatpush1.bf16.msra.mxu1 %v4759_v54  ;;  %v4843_v54 = vld [vmem:[%s7061_s2 + $0x4a8] ss:$16 sps:$4 sm:$0xff]  }
  0xb2   :  { %2824 = vmatpush1.bf16.msra.mxu0 %v4756_v53  ;;  %3040 = vmatprep.subr.bf16.mxu1 %v4767_v57  ;;  %v4840_v53 = vld [vmem:[%s7061_s2 + $0x8a0] ss:$16 sps:$4 sm:$0xff]   ;;  %v4851_v57 = vld [vmem:[%s7061_s2 + $0x4cc] ss:$16 sps:$4 sm:$0xff]  }
  0xb3   :  { %2825 = vmatprep.subr.bf16.mxu0 %v4764_v56  ;;  %v4848_v56 = vld [vmem:[%s7061_s2 + $0x8c4] ss:$16 sps:$4 sm:$0xff]  }
  0xb5   :  { %3041 = vmatpush1.bf16.msra.mxu1 %v4765_v59  ;;  %v4849_v59 = vld [vmem:[%s7061_s2 + $0x4c8] ss:$16 sps:$4 sm:$0xff]  }
  0xb6   :  { %2826 = vmatpush1.bf16.msra.mxu0 %v4762_v58  ;;  %3042 = vmatprep.subr.bf16.mxu1 %v4773_v61  ;;  %v4846_v58 = vld [vmem:[%s7061_s2 + $0x8c0] ss:$16 sps:$4 sm:$0xff]   ;;  %v4857_v61 = vld [vmem:[%s7061_s2 + $0x4ec] ss:$16 sps:$4 sm:$0xff]  }
  0xb7   :  { %2827 = vmatprep.subr.bf16.mxu0 %v4770_v60  ;;  %v4854_v60 = vld [vmem:[%s7061_s2 + $0x8e4] ss:$16 sps:$4 sm:$0xff]  }
  0xb9   :  { %3043 = vmatpush1.bf16.msra.mxu1 %v4771_v63  ;;  %v4855_v63 = vld [vmem:[%s7061_s2 + $0x4e8] ss:$16 sps:$4 sm:$0xff]  }
  0xba   :  { %2828 = vmatpush1.bf16.msra.mxu0 %v4768_v62  ;;  %3044 = vmatprep.subr.bf16.mxu1 %v4779_v1  ;;  %v4852_v62 = vld [vmem:[%s7061_s2 + $0x8e0] ss:$16 sps:$4 sm:$0xff]   ;;  %v4863_v1 = vld [vmem:[%s7061_s2 + $0x50c] ss:$16 sps:$4 sm:$0xff]  }
  0xbb   :  { %2829 = vmatprep.subr.bf16.mxu0 %v4776_v0  ;;  %v4860_v0 = vld [vmem:[%s7061_s2 + $0x904] ss:$16 sps:$4 sm:$0xff]  }
  0xbd   :  { %3045 = vmatpush1.bf16.msra.mxu1 %v4777_v3  ;;  %v4861_v3 = vld [vmem:[%s7061_s2 + $0x508] ss:$16 sps:$4 sm:$0xff]  }
  0xbe   :  { %2830 = vmatpush1.bf16.msra.mxu0 %v4774_v2  ;;  %3046 = vmatprep.subr.bf16.mxu1 %v4785_v5  ;;  %v4858_v2 = vld [vmem:[%s7061_s2 + $0x900] ss:$16 sps:$4 sm:$0xff]   ;;  %v4869_v5 = vld [vmem:[%s7061_s2 + $0x52c] ss:$16 sps:$4 sm:$0xff]  }
  0xbf   :  { %2831 = vmatprep.subr.bf16.mxu0 %v4782_v4  ;;  %v4866_v4 = vld [vmem:[%s7061_s2 + $0x924] ss:$16 sps:$4 sm:$0xff]  }
  0xc1   :  { %3047 = vmatpush1.bf16.msra.mxu1 %v4783_v7  ;;  %v4867_v7 = vld [vmem:[%s7061_s2 + $0x528] ss:$16 sps:$4 sm:$0xff]  }
  0xc2   :  { %2832 = vmatpush1.bf16.msra.mxu0 %v4780_v6  ;;  %3048 = vmatprep.subr.bf16.mxu1 %v4791_v9  ;;  %v4864_v6 = vld [vmem:[%s7061_s2 + $0x920] ss:$16 sps:$4 sm:$0xff]   ;;  %v4875_v9 = vld [vmem:[%s7061_s2 + $0x54c] ss:$16 sps:$4 sm:$0xff]  }
  0xc3   :  { %2833 = vmatprep.subr.bf16.mxu0 %v4788_v8  ;;  %v4872_v8 = vld [vmem:[%s7061_s2 + $0x944] ss:$16 sps:$4 sm:$0xff]  }
  0xc5   :  { %3049 = vmatpush1.bf16.msra.mxu1 %v4789_v11  ;;  %v4873_v11 = vld [vmem:[%s7061_s2 + $0x548] ss:$16 sps:$4 sm:$0xff]  }
  0xc6   :  { %2834 = vmatpush1.bf16.msra.mxu0 %v4786_v10  ;;  %3050 = vmatprep.subr.bf16.mxu1 %v4797_v14  ;;  %v4870_v10 = vld [vmem:[%s7061_s2 + $0x940] ss:$16 sps:$4 sm:$0xff]   ;;  %v4881_v14 = vld [vmem:[%s7061_s2 + $0x56c] ss:$16 sps:$4 sm:$0xff]  }
  0xc7   :  { %2835 = vmatprep.subr.bf16.mxu0 %v4794_v13  ;;  %v4878_v13 = vld [vmem:[%s7061_s2 + $0x964] ss:$16 sps:$4 sm:$0xff]  }
  0xc9   :  { %3051 = vmatpush1.bf16.msra.mxu1 %v4795_v17  ;;  %v4879_v17 = vld [vmem:[%s7061_s2 + $0x568] ss:$16 sps:$4 sm:$0xff]  }
  0xca   :  { %2836 = vmatpush1.bf16.msra.mxu0 %v4792_v16  ;;  %3052 = vmatprep.subr.bf16.mxu1 %v4803_v19  ;;  %v4876_v16 = vld [vmem:[%s7061_s2 + $0x960] ss:$16 sps:$4 sm:$0xff]   ;;  %v4887_v19 = vld [vmem:[%s7061_s2 + $0x58c] ss:$16 sps:$4 sm:$0xff]  }
  0xcb   :  { %2837 = vmatprep.subr.bf16.mxu0 %v4800_v18  ;;  %v4884_v18 = vld [vmem:[%s7061_s2 + $0x984] ss:$16 sps:$4 sm:$0xff]  }
  0xcd   :  { %3053 = vmatpush1.bf16.msra.mxu1 %v4801_v21  ;;  %v4885_v21 = vld [vmem:[%s7061_s2 + $0x588] ss:$16 sps:$4 sm:$0xff]  }
  0xce   :  { %2838 = vmatpush1.bf16.msra.mxu0 %v4798_v20  ;;  %3054 = vmatprep.subr.bf16.mxu1 %v4809_v23  ;;  %v4882_v20 = vld [vmem:[%s7061_s2 + $0x980] ss:$16 sps:$4 sm:$0xff]   ;;  %v4893_v23 = vld [vmem:[%s7061_s2 + $0x5ac] ss:$16 sps:$4 sm:$0xff]  }
  0xcf   :  { %2839 = vmatprep.subr.bf16.mxu0 %v4806_v22  ;;  %v4890_v22 = vld [vmem:[%s7061_s2 + $0x9a4] ss:$16 sps:$4 sm:$0xff]  }
  0xd1   :  { %3055 = vmatpush1.bf16.msra.mxu1 %v4807_v26  ;;  %v4891_v26 = vld [vmem:[%s7061_s2 + $0x5a8] ss:$16 sps:$4 sm:$0xff]  }
  0xd2   :  { %2840 = vmatpush1.bf16.msra.mxu0 %v4804_v25  ;;  %3067 = vmatprep.subr.bf16.mxu1 %v4815_v30  ;;  %v4888_v25 = vld [vmem:[%s7061_s2 + $0x9a0] ss:$16 sps:$4 sm:$0xff]   ;;  %v4897_v30 = vld [vmem:[%s7061_s2 + $0x5c8] ss:$16 sps:$4 sm:$0xff]  }
  0xd3   :  { %2852 = vmatprep.subr.bf16.mxu0 %v4812_v27  ;;  %v4896_v27 = vld [vmem:[%s7061_s2 + $0x9c4] ss:$16 sps:$4 sm:$0xff]  }
  0xd4   :  { %3057 = vmatmul.mubr.bf16.vlgmr.msra.gmra.mrb[4].mxu1 %v5604_v15  ;;  %v4827_v15 = vld [vmem:[%s7061_s2 + $0x44c] ss:$16 sps:$4 sm:$0xff]  }
  0xd5   :  { %2842 = vmatmul.mubr.bf16.vlgmr.msra.gmra.mrb[0].mxu0 %v6028_v33  ;;  %3068 = vmatpush1.bf16.msra.mxu1 %v4813_v31  ;;  %v4905_v31 = vld [vmem:[%s7061_s2 + $0x5ec] ss:$16 sps:$4 sm:$0xff]  }
  0xd6   :  { %2853 = vmatpush1.bf16.msra.mxu0 %v4810_v12  ;;  %3069 = vmatprep.subr.bf16.mxu1 %v4821_v36  ;;  %v4902_v12 = vld [vmem:[%s7061_s2 + $0x9e4] ss:$16 sps:$4 sm:$0xff]  }
  0xd7   :  { %2854 = vmatprep.subr.bf16.mxu0 %v4818_v55  ;;  %2884 = vmatprep.mubr.bf16.mxu0 %v6042_v37  ;;  %v50_v55 = vld [vmem:[%s7060_s1 + $0x40] sm:$0xff]  ;;  %v64_v36 = vld [vmem:[%s7060_s1 + $0xb0] sm:$0xff] }
  0xd8   :  { %3099 = vmatprep.mubr.bf16.mxu1 %v5693_v44  ;;  %v4833_v44 = vld [vmem:[%s7061_s2 + $0x46c] ss:$16 sps:$4 sm:$0xff]  }
  0xd9   :  { %3070 = vmatpush1.bf16.msra.mxu1 %v4819_v39  ;;  %v4911_v39 = vld [vmem:[%s7061_s2 + $0x60c] ss:$16 sps:$4 sm:$0xff]  }
  0xda   :  { %2855 = vmatpush1.bf16.msra.mxu0 %v4816_v38  ;;  %3071 = vmatprep.subr.bf16.mxu1 %v4827_v15  ;;  %v4908_v38 = vld [vmem:[%s7061_s2 + $0xa04] ss:$16 sps:$4 sm:$0xff]   ;;  %v4909_v15 = vld [vmem:[%s7061_s2 + $0x608] ss:$16 sps:$4 sm:$0xff]  }
  0xdb   :  { %2856 = vmatprep.subr.bf16.mxu0 %v4824_v40  ;;  %v4906_v40 = vld [vmem:[%s7061_s2 + $0xa00] ss:$16 sps:$4 sm:$0xff]  }
  0xdd   :  { %3072 = vmatpush1.bf16.msra.mxu1 %v4825_v42  ;;  %v53_v42 = vld [vmem:[%s7060_s1 + $0x58] sm:$0xff] }
  0xde   :  { %2857 = vmatpush1.bf16.msra.mxu0 %v4822_v41  ;;  %3073 = vmatprep.subr.bf16.mxu1 %v4833_v44  ;;  %v6240_v41 = vpack.c.bf16 %v64_v36, %v50_v55  ;;  %v4914_v44 = vld [vmem:[%s7061_s2 + $0xa24] ss:$16 sps:$4 sm:$0xff]   ;;  %v4989_v36 = vld [vmem:[%s7061_s2 + $0x7ac] ss:$16 sps:$4 sm:$0xff]  }
  0xdf   :  { %2858 = vmatprep.subr.bf16.mxu0 %v4830_v43  ;;  %v67_v43 = vld [vmem:[%s7060_s1 + $0xc8] sm:$0xff]  ;;  %v4986_v55 = vld [vmem:[%s7061_s2 + $0xba4] ss:$16 sps:$4 sm:$0xff]  }
  0xe1   :  { %3074 = vmatpush1.bf16.msra.mxu1 %v4831_v46  ;;  %v6254_v46 = vpack.c.bf16 %v67_v43, %v53_v42  ;;  %v4990_v42 = vld [vmem:[%s7061_s2 + $0xbc0] ss:$16 sps:$4 sm:$0xff]   ;;  %v4993_v43 = vld [vmem:[%s7061_s2 + $0x7c8] ss:$16 sps:$4 sm:$0xff]  }
  0xe2   :  { %2859 = vmatpush1.bf16.msra.mxu0 %v4828_v45  ;;  %3075 = vmatprep.subr.bf16.mxu1 %v4839_v48  ;;  %v4917_v45 = vld [vmem:[%s7061_s2 + $0x62c] ss:$16 sps:$4 sm:$0xff]   ;;  %v4915_v48 = vld [vmem:[%s7061_s2 + $0x628] ss:$16 sps:$4 sm:$0xff]  }
  0xe3   :  { %2860 = vmatprep.subr.bf16.mxu0 %v4836_v47  ;;  %v4912_v47 = vld [vmem:[%s7061_s2 + $0xa20] ss:$16 sps:$4 sm:$0xff]  }
  0xe5   :  { %3076 = vmatpush1.bf16.msra.mxu1 %v4837_v50  ;;  %v4918_v50 = vld [vmem:[%s7061_s2 + $0xa40] ss:$16 sps:$4 sm:$0xff]  }
  0xe6   :  { %2861 = vmatpush1.bf16.msra.mxu0 %v4834_v49  ;;  %3077 = vmatprep.subr.bf16.mxu1 %v4845_v52  ;;  %v4920_v49 = vld [vmem:[%s7061_s2 + $0xa44] ss:$16 sps:$4 sm:$0xff]  }
  0xe7   :  { %2862 = vmatprep.subr.bf16.mxu0 %v4842_v51  ;;  %v4921_v51 = vld [vmem:[%s7061_s2 + $0x648] ss:$16 sps:$4 sm:$0xff]   ;;  %v4926_v52 = vld [vmem:[%s7061_s2 + $0xa64] ss:$16 sps:$4 sm:$0xff]  }
  0xe9   :  { %3078 = vmatpush1.bf16.msra.mxu1 %v4843_v54  ;;  %v4924_v54 = vld [vmem:[%s7061_s2 + $0xa60] ss:$16 sps:$4 sm:$0xff]  }
  0xea   :  { %2863 = vmatpush1.bf16.msra.mxu0 %v4840_v53  ;;  %3079 = vmatprep.subr.bf16.mxu1 %v4851_v57  ;;  %v4929_v53 = vld [vmem:[%s7061_s2 + $0x66c] ss:$16 sps:$4 sm:$0xff]  }
  0xeb   :  { %2864 = vmatprep.subr.bf16.mxu0 %v4848_v56  ;;  %v4932_v56 = vld [vmem:[%s7061_s2 + $0xa84] ss:$16 sps:$4 sm:$0xff]   ;;  %v4935_v57 = vld [vmem:[%s7061_s2 + $0x68c] ss:$16 sps:$4 sm:$0xff]  }
  0xed   :  { %3080 = vmatpush1.bf16.msra.mxu1 %v4849_v59  ;;  %v4933_v59 = vld [vmem:[%s7061_s2 + $0x688] ss:$16 sps:$4 sm:$0xff]  }
  0xee   :  { %2865 = vmatpush1.bf16.msra.mxu0 %v4846_v58  ;;  %3081 = vmatprep.subr.bf16.mxu1 %v4857_v61  ;;  %v4930_v58 = vld [vmem:[%s7061_s2 + $0xa80] ss:$16 sps:$4 sm:$0xff]   ;;  %v4941_v61 = vld [vmem:[%s7061_s2 + $0x6ac] ss:$16 sps:$4 sm:$0xff]  }
  0xef   :  { %2866 = vmatprep.subr.bf16.mxu0 %v4854_v60  ;;  %v4938_v60 = vld [vmem:[%s7061_s2 + $0xaa4] ss:$16 sps:$4 sm:$0xff]  }
  0xf1   :  { %3082 = vmatpush1.bf16.msra.mxu1 %v4855_v63  ;;  %v4939_v63 = vld [vmem:[%s7061_s2 + $0x6a8] ss:$16 sps:$4 sm:$0xff]  }
  0xf2   :  { %2867 = vmatpush1.bf16.msra.mxu0 %v4852_v62  ;;  %3083 = vmatprep.subr.bf16.mxu1 %v4863_v1  ;;  %v4936_v62 = vld [vmem:[%s7061_s2 + $0xaa0] ss:$16 sps:$4 sm:$0xff]   ;;  %v4947_v1 = vld [vmem:[%s7061_s2 + $0x6cc] ss:$16 sps:$4 sm:$0xff]  }
  0xf3   :  { %2868 = vmatprep.subr.bf16.mxu0 %v4860_v0  ;;  %v4944_v0 = vld [vmem:[%s7061_s2 + $0xac4] ss:$16 sps:$4 sm:$0xff]  }
  0xf5   :  { %3084 = vmatpush1.bf16.msra.mxu1 %v4861_v3  ;;  %v4942_v3 = vld [vmem:[%s7061_s2 + $0xac0] ss:$16 sps:$4 sm:$0xff]  }
  0xf6   :  { %2869 = vmatpush1.bf16.msra.mxu0 %v4858_v2  ;;  %3085 = vmatprep.subr.bf16.mxu1 %v4869_v5 }
  0xf7   :  { %2870 = vmatprep.subr.bf16.mxu0 %v4866_v4  ;;  %v4945_v4 = vld [vmem:[%s7061_s2 + $0x6c8] ss:$16 sps:$4 sm:$0xff]  }
  0xf9   :  { %3086 = vmatpush1.bf16.msra.mxu1 %v4867_v7  ;;  %v4950_v7 = vld [vmem:[%s7061_s2 + $0xae4] ss:$16 sps:$4 sm:$0xff]  }
  0xfa   :  { %2871 = vmatpush1.bf16.msra.mxu0 %v4864_v6  ;;  %3087 = vmatprep.subr.bf16.mxu1 %v4875_v9 }
  0xfb   :  { %2872 = vmatprep.subr.bf16.mxu0 %v4872_v8  ;;  %v4953_v8 = vld [vmem:[%s7061_s2 + $0x6ec] ss:$16 sps:$4 sm:$0xff]  }
  0xfd   :  { %3088 = vmatpush1.bf16.msra.mxu1 %v4873_v11  ;;  %v4951_v11 = vld [vmem:[%s7061_s2 + $0x6e8] ss:$16 sps:$4 sm:$0xff]  }
  0xfe   :  { %2873 = vmatpush1.bf16.msra.mxu0 %v4870_v10  ;;  %3089 = vmatprep.subr.bf16.mxu1 %v4881_v14  ;;  %v4948_v10 = vld [vmem:[%s7061_s2 + $0xae0] ss:$16 sps:$4 sm:$0xff]   ;;  %v4959_v14 = vld [vmem:[%s7061_s2 + $0x70c] ss:$16 sps:$4 sm:$0xff]  }
  0xff   :  { %2874 = vmatprep.subr.bf16.mxu0 %v4878_v13  ;;  %v4956_v13 = vld [vmem:[%s7061_s2 + $0xb04] ss:$16 sps:$4 sm:$0xff]  }
 0x101   :  { %3090 = vmatpush1.bf16.msra.mxu1 %v4879_v17  ;;  %v4957_v17 = vld [vmem:[%s7061_s2 + $0x708] ss:$16 sps:$4 sm:$0xff]  }
 0x102   :  { %2875 = vmatpush1.bf16.msra.mxu0 %v4876_v16  ;;  %3091 = vmatprep.subr.bf16.mxu1 %v4887_v19  ;;  %v4954_v16 = vld [vmem:[%s7061_s2 + $0xb00] ss:$16 sps:$4 sm:$0xff]   ;;  %v4965_v19 = vld [vmem:[%s7061_s2 + $0x72c] ss:$16 sps:$4 sm:$0xff]  }
 0x103   :  { %2876 = vmatprep.subr.bf16.mxu0 %v4884_v18  ;;  %v4962_v18 = vld [vmem:[%s7061_s2 + $0xb24] ss:$16 sps:$4 sm:$0xff]  }
 0x105   :  { %3092 = vmatpush1.bf16.msra.mxu1 %v4885_v21  ;;  %v4963_v21 = vld [vmem:[%s7061_s2 + $0x728] ss:$16 sps:$4 sm:$0xff]  }
 0x106   :  { %2877 = vmatpush1.bf16.msra.mxu0 %v4882_v20  ;;  %3093 = vmatprep.subr.bf16.mxu1 %v4893_v23  ;;  %v4960_v20 = vld [vmem:[%s7061_s2 + $0xb20] ss:$16 sps:$4 sm:$0xff]   ;;  %v4971_v23 = vld [vmem:[%s7061_s2 + $0x74c] ss:$16 sps:$4 sm:$0xff]  }
 0x107   :  { %2878 = vmatprep.subr.bf16.mxu0 %v4890_v22  ;;  %v4968_v22 = vld [vmem:[%s7061_s2 + $0xb44] ss:$16 sps:$4 sm:$0xff]  }
 0x109   :  { %3094 = vmatpush1.bf16.msra.mxu1 %v4891_v26  ;;  %v4969_v26 = vld [vmem:[%s7061_s2 + $0x748] ss:$16 sps:$4 sm:$0xff]  }
 0x10a   :  { %2879 = vmatpush1.bf16.msra.mxu0 %v4888_v25  ;;  %3095 = vmatprep.subr.bf16.mxu1 %v4899_v28  ;;  %v4966_v25 = vld [vmem:[%s7061_s2 + $0xb40] ss:$16 sps:$4 sm:$0xff]   ;;  %v4977_v28 = vld [vmem:[%s7061_s2 + $0x76c] ss:$16 sps:$4 sm:$0xff]  }
 0x10b   :  { %2880 = vmatprep.subr.bf16.mxu0 %v4896_v27  ;;  %v4974_v27 = vld [vmem:[%s7061_s2 + $0xb64] ss:$16 sps:$4 sm:$0xff]  }
 0x10d   :  { %3096 = vmatpush1.bf16.msra.mxu1 %v4897_v30  ;;  %v4975_v30 = vld [vmem:[%s7061_s2 + $0x768] ss:$16 sps:$4 sm:$0xff]  }
 0x10e   :  { %2881 = vmatpush1.bf16.msra.mxu0 %v4894_v29  ;;  %3097 = vmatprep.subr.bf16.mxu1 %v4905_v31  ;;  %v4972_v29 = vld [vmem:[%s7061_s2 + $0xb60] ss:$16 sps:$4 sm:$0xff]   ;;  %v4983_v31 = vld [vmem:[%s7061_s2 + $0x78c] ss:$16 sps:$4 sm:$0xff]  }
 0x10f   :  { %2882 = vmatprep.subr.bf16.mxu0 %v4902_v12  ;;  %v4980_v12 = vld [vmem:[%s7061_s2 + $0xb84] ss:$16 sps:$4 sm:$0xff]  }
 0x111   :  { %3098 = vmatpush1.bf16.msra.mxu1 %v4903_v35  ;;  %v4981_v35 = vld [vmem:[%s7061_s2 + $0x788] ss:$16 sps:$4 sm:$0xff]  }
 0x112   :  { %2883 = vmatpush1.bf16.msra.mxu0 %v4900_v34  ;;  %3110 = vmatprep.subr.bf16.mxu1 %v4911_v39  ;;  %v4978_v34 = vld [vmem:[%s7061_s2 + $0xb80] ss:$16 sps:$4 sm:$0xff]   ;;  %v4987_v39 = vld [vmem:[%s7061_s2 + $0x7a8] ss:$16 sps:$4 sm:$0xff]  }
 0x113   :  { %2895 = vmatprep.subr.bf16.mxu0 %v4908_v38  ;;  %v4984_v38 = vld [vmem:[%s7061_s2 + $0xba0] ss:$16 sps:$4 sm:$0xff]  }
 0x114   :  { %3100 = vmatmul.mubr.bf16.vlgmr.msra.gmra.mrb[4].mxu1 %v5816_v24  ;;  %v4923_v24 = vld [vmem:[%s7061_s2 + $0x64c] ss:$16 sps:$4 sm:$0xff]  }
 0x115   :  { %2885 = vmatmul.mubr.bf16.vlgmr.msra.gmra.mrb[0].mxu0 %v6240_v41  ;;  %3111 = vmatpush1.bf16.msra.mxu1 %v4909_v15  ;;  %v4995_v15 = vld [vmem:[%s7061_s2 + $0x7cc] ss:$16 sps:$4 sm:$0xff]  }
 0x116   :  { %2896 = vmatpush1.bf16.msra.mxu0 %v4906_v40  ;;  %3112 = vmatprep.subr.bf16.mxu1 %v4917_v45  ;;  %v4992_v40 = vld [vmem:[%s7061_s2 + $0xbc4] ss:$16 sps:$4 sm:$0xff]   ;;  %v5001_v45 = vld [vmem:[%s7061_s2 + $0x7ec] ss:$16 sps:$4 sm:$0xff]  }
 0x117   :  { %2897 = vmatprep.subr.bf16.mxu0 %v4914_v44  ;;  %2927 = vmatprep.mubr.bf16.mxu0 %v6254_v46  ;;  %v4998_v44 = vld [vmem:[%s7061_s2 + $0xbe4] ss:$16 sps:$4 sm:$0xff]  }
 0x118   :  { %3142 = vmatprep.mubr.bf16.mxu1 %v5844_v32  ;;  %v4927_v32 = vld [vmem:[%s7061_s2 + $0x668] ss:$16 sps:$4 sm:$0xff]  }
 0x119   :  { %3113 = vmatpush1.bf16.msra.mxu1 %v4915_v48  ;;  %v4999_v48 = vld [vmem:[%s7061_s2 + $0x7e8] ss:$16 sps:$4 sm:$0xff]  }
 0x11a   :  { %2898 = vmatpush1.bf16.msra.mxu0 %v4912_v47  ;;  %3114 = vmatprep.subr.bf16.mxu1 %v4923_v24  ;;  %v4996_v47 = vld [vmem:[%s7061_s2 + $0xbe0] ss:$16 sps:$4 sm:$0xff]  }
 0x11b   :  { %2899 = vmatprep.subr.bf16.mxu0 %v4920_v49  ;;  %v52_v49 = vld [vmem:[%s7060_s1 + $0x50] sm:$0xff]  ;;  %v66_v24 = vld [vmem:[%s7060_s1 + $0xc0] sm:$0xff] }
 0x11d   :  { %3115 = vmatpush1.bf16.msra.mxu1 %v4921_v51  ;;  %v5007_v51 = vld [vmem:[%s7061_s2 + $0x80c] ss:$16 sps:$4 sm:$0xff]  }
 0x11e   :  { %2900 = vmatpush1.bf16.msra.mxu0 %v4918_v50  ;;  %3116 = vmatprep.subr.bf16.mxu1 %v4929_v53  ;;  %v5004_v50 = vld [vmem:[%s7061_s2 + $0xc04] ss:$16 sps:$4 sm:$0xff]   ;;  %v55_v53 = vld [vmem:[%s7060_s1 + $0x68] sm:$0xff] }
 0x11f   :  { %2901 = vmatprep.subr.bf16.mxu0 %v4926_v52  ;;  %v6454_v52 = vpack.c.bf16 %v66_v24, %v52_v49  ;;  %v5074_v49 = vld [vmem:[%s7061_s2 + $0x988] ss:$16 sps:$4 sm:$0xff]   ;;  %v5079_v24 = vld [vmem:[%s7061_s2 + $0x9ac] ss:$16 sps:$4 sm:$0xff]  }
 0x121   :  { %3117 = vmatpush1.bf16.msra.mxu1 %v4927_v32  ;;  %v5002_v32 = vld [vmem:[%s7061_s2 + $0xc00] ss:$16 sps:$4 sm:$0xff]  }
 0x122   :  { %2902 = vmatpush1.bf16.msra.mxu0 %v4924_v54  ;;  %3118 = vmatprep.subr.bf16.mxu1 %v4935_v57  ;;  %v69_v54 = vld [vmem:[%s7060_s1 + $0xd8] sm:$0xff]  ;;  %v5010_v57 = vld [vmem:[%s7061_s2 + $0xc24] ss:$16 sps:$4 sm:$0xff]  }
 0x123   :  { %2903 = vmatprep.subr.bf16.mxu0 %v4932_v56  ;;  %v5005_v56 = vld [vmem:[%s7061_s2 + $0x808] ss:$16 sps:$4 sm:$0xff]  }
 0x125   :  { %3119 = vmatpush1.bf16.msra.mxu1 %v4933_v59  ;;  %v6474_v59 = vpack.c.bf16 %v69_v54, %v55_v53  ;;  %v5080_v53 = vld [vmem:[%s7061_s2 + $0x9c8] ss:$16 sps:$4 sm:$0xff]   ;;  %v5085_v54 = vld [vmem:[%s7061_s2 + $0x9ec] ss:$16 sps:$4 sm:$0xff]  }
 0x126   :  { %2904 = vmatpush1.bf16.msra.mxu0 %v4930_v58  ;;  %3120 = vmatprep.subr.bf16.mxu1 %v4941_v61  ;;  %v5013_v58 = vld [vmem:[%s7061_s2 + $0x82c] ss:$16 sps:$4 sm:$0xff]   ;;  %v5011_v61 = vld [vmem:[%s7061_s2 + $0x828] ss:$16 sps:$4 sm:$0xff]  }
 0x127   :  { %2905 = vmatprep.subr.bf16.mxu0 %v4938_v60  ;;  %v6320_v2 = vpop.f32.mrb[0].mxu1  ;;  %v5008_v60 = vld [vmem:[%s7061_s2 + $0xc20] ss:$16 sps:$4 sm:$0xff]  }
 0x128   :  { %v6328_v5 = vpop.f32.mrb[1].mxu1 }
 0x129   :  { %v6330_v6 = vpop.f32.mrb[2].mxu1  ;;  %3121 = vmatpush1.bf16.msra.mxu1 %v4939_v63  ;;  %v5014_v63 = vld [vmem:[%s7061_s2 + $0xc40] ss:$16 sps:$4 sm:$0xff]  }
 0x12a   :  { %2906 = vmatpush1.bf16.msra.mxu0 %v4936_v62  ;;  %v6338_v9 = vpop.f32.mrb[3].mxu1  ;;  %3122 = vmatprep.subr.bf16.mxu1 %v4947_v1  ;;  %v5016_v62 = vld [vmem:[%s7061_s2 + $0xc44] ss:$16 sps:$4 sm:$0xff]  }
 0x12b   :  { %2907 = vmatprep.subr.bf16.mxu0 %v4944_v0  ;;  %v5017_v0 = vld [vmem:[%s7061_s2 + $0x848] ss:$16 sps:$4 sm:$0xff]   ;;  %v5022_v1 = vld [vmem:[%s7061_s2 + $0xc64] ss:$16 sps:$4 sm:$0xff]  }
 0x12d   :  { %3123 = vmatpush1.bf16.msra.mxu1 %v4945_v4  ;;  %v5023_v4 = vld [vmem:[%s7061_s2 + $0x868] ss:$16 sps:$4 sm:$0xff]  }
 0x12e   :  { %2908 = vmatpush1.bf16.msra.mxu0 %v4942_v3  ;;  %3124 = vmatprep.subr.bf16.mxu1 %v4953_v8  ;;  %v5020_v3 = vld [vmem:[%s7061_s2 + $0xc60] ss:$16 sps:$4 sm:$0xff]   ;;  %v5031_v8 = vld [vmem:[%s7061_s2 + $0x88c] ss:$16 sps:$4 sm:$0xff]  }
 0x12f   :  { %2909 = vmatprep.subr.bf16.mxu0 %v4950_v7  ;;  %v5028_v7 = vld [vmem:[%s7061_s2 + $0xc84] ss:$16 sps:$4 sm:$0xff]  }
 0x131   :  { %3125 = vmatpush1.bf16.msra.mxu1 %v4951_v11  ;;  %v5029_v11 = vld [vmem:[%s7061_s2 + $0x888] ss:$16 sps:$4 sm:$0xff]  }
 0x132   :  { %2910 = vmatpush1.bf16.msra.mxu0 %v4948_v10  ;;  %3126 = vmatprep.subr.bf16.mxu1 %v4959_v14  ;;  %v5026_v10 = vld [vmem:[%s7061_s2 + $0xc80] ss:$16 sps:$4 sm:$0xff]   ;;  %v5037_v14 = vld [vmem:[%s7061_s2 + $0x8ac] ss:$16 sps:$4 sm:$0xff]  }
 0x133   :  { %2911 = vmatprep.subr.bf16.mxu0 %v4956_v13  ;;  %v5034_v13 = vld [vmem:[%s7061_s2 + $0xca4] ss:$16 sps:$4 sm:$0xff]  }
 0x135   :  { %3127 = vmatpush1.bf16.msra.mxu1 %v4957_v17  ;;  %v5035_v17 = vld [vmem:[%s7061_s2 + $0x8a8] ss:$16 sps:$4 sm:$0xff]  }
 0x136   :  { %2912 = vmatpush1.bf16.msra.mxu0 %v4954_v16  ;;  %3128 = vmatprep.subr.bf16.mxu1 %v4965_v19  ;;  %v5032_v16 = vld [vmem:[%s7061_s2 + $0xca0] ss:$16 sps:$4 sm:$0xff]   ;;  %v5043_v19 = vld [vmem:[%s7061_s2 + $0x8cc] ss:$16 sps:$4 sm:$0xff]  }
 0x137   :  { %2913 = vmatprep.subr.bf16.mxu0 %v4962_v18  ;;  %v5040_v18 = vld [vmem:[%s7061_s2 + $0xcc4] ss:$16 sps:$4 sm:$0xff]  }
 0x139   :  { %3129 = vmatpush1.bf16.msra.mxu1 %v4963_v21  ;;  %v5041_v21 = vld [vmem:[%s7061_s2 + $0x8c8] ss:$16 sps:$4 sm:$0xff]  }
 0x13a   :  { %2914 = vmatpush1.bf16.msra.mxu0 %v4960_v20  ;;  %3130 = vmatprep.subr.bf16.mxu1 %v4971_v23  ;;  %v5038_v20 = vld [vmem:[%s7061_s2 + $0xcc0] ss:$16 sps:$4 sm:$0xff]   ;;  %v5049_v23 = vld [vmem:[%s7061_s2 + $0x8ec] ss:$16 sps:$4 sm:$0xff]  }
 0x13b   :  { %2915 = vmatprep.subr.bf16.mxu0 %v4968_v22  ;;  %v5046_v22 = vld [vmem:[%s7061_s2 + $0xce4] ss:$16 sps:$4 sm:$0xff]  }
 0x13d   :  { %3131 = vmatpush1.bf16.msra.mxu1 %v4969_v26  ;;  %v5047_v26 = vld [vmem:[%s7061_s2 + $0x8e8] ss:$16 sps:$4 sm:$0xff]  }
 0x13e   :  { %2916 = vmatpush1.bf16.msra.mxu0 %v4966_v25  ;;  %3132 = vmatprep.subr.bf16.mxu1 %v4977_v28  ;;  %v5044_v25 = vld [vmem:[%s7061_s2 + $0xce0] ss:$16 sps:$4 sm:$0xff]   ;;  %v5055_v28 = vld [vmem:[%s7061_s2 + $0x90c] ss:$16 sps:$4 sm:$0xff]  }
 0x13f   :  { %2917 = vmatprep.subr.bf16.mxu0 %v4974_v27  ;;  %v5052_v27 = vld [vmem:[%s7061_s2 + $0xd04] ss:$16 sps:$4 sm:$0xff]  }
 0x141   :  { %3133 = vmatpush1.bf16.msra.mxu1 %v4975_v30  ;;  %v5053_v30 = vld [vmem:[%s7061_s2 + $0x908] ss:$16 sps:$4 sm:$0xff]  }
 0x142   :  { %2918 = vmatpush1.bf16.msra.mxu0 %v4972_v29  ;;  %3134 = vmatprep.subr.bf16.mxu1 %v4983_v31  ;;  %v5050_v29 = vld [vmem:[%s7061_s2 + $0xd00] ss:$16 sps:$4 sm:$0xff]   ;;  %v5061_v31 = vld [vmem:[%s7061_s2 + $0x92c] ss:$16 sps:$4 sm:$0xff]  }
 0x143   :  { %2919 = vmatprep.subr.bf16.mxu0 %v4980_v12  ;;  %v5058_v12 = vld [vmem:[%s7061_s2 + $0xd24] ss:$16 sps:$4 sm:$0xff]  }
 0x145   :  { %3135 = vmatpush1.bf16.msra.mxu1 %v4981_v35  ;;  %v5059_v35 = vld [vmem:[%s7061_s2 + $0x928] ss:$16 sps:$4 sm:$0xff]  }
 0x146   :  { %2920 = vmatpush1.bf16.msra.mxu0 %v4978_v34  ;;  %3136 = vmatprep.subr.bf16.mxu1 %v4989_v36  ;;  %v5056_v34 = vld [vmem:[%s7061_s2 + $0xd20] ss:$16 sps:$4 sm:$0xff]   ;;  %v5067_v36 = vld [vmem:[%s7061_s2 + $0x94c] ss:$16 sps:$4 sm:$0xff]  }
 0x147   :  { %2921 = vmatprep.subr.bf16.mxu0 %v4986_v55  ;;  %v5064_v55 = vld [vmem:[%s7061_s2 + $0xd44] ss:$16 sps:$4 sm:$0xff]  }
 0x149   :  { %3137 = vmatpush1.bf16.msra.mxu1 %v4987_v39  ;;  %v5065_v39 = vld [vmem:[%s7061_s2 + $0x948] ss:$16 sps:$4 sm:$0xff]  }
 0x14a   :  { %2922 = vmatpush1.bf16.msra.mxu0 %v4984_v38  ;;  %3138 = vmatprep.subr.bf16.mxu1 %v4995_v15  ;;  %v5062_v38 = vld [vmem:[%s7061_s2 + $0xd40] ss:$16 sps:$4 sm:$0xff]   ;;  %v5073_v15 = vld [vmem:[%s7061_s2 + $0x96c] ss:$16 sps:$4 sm:$0xff]  }
 0x14b   :  { %2923 = vmatprep.subr.bf16.mxu0 %v4992_v40  ;;  %v5070_v40 = vld [vmem:[%s7061_s2 + $0xd64] ss:$16 sps:$4 sm:$0xff]  }
 0x14d   :  { %3139 = vmatpush1.bf16.msra.mxu1 %v4993_v43  ;;  %v5071_v43 = vld [vmem:[%s7061_s2 + $0x968] ss:$16 sps:$4 sm:$0xff]  }
 0x14e   :  { %2924 = vmatpush1.bf16.msra.mxu0 %v4990_v42  ;;  %3140 = vmatprep.subr.bf16.mxu1 %v5001_v45  ;;  %v5068_v42 = vld [vmem:[%s7061_s2 + $0xd60] ss:$16 sps:$4 sm:$0xff]  }
 0x14f   :  { %2925 = vmatprep.subr.bf16.mxu0 %v4998_v44  ;;  %v54_v44 = vld [vmem:[%s7060_s1 + $0x60] sm:$0xff]  ;;  %v68_v45 = vld [vmem:[%s7060_s1 + $0xd0] sm:$0xff] }
 0x151   :  { %3141 = vmatpush1.bf16.msra.mxu1 %v4999_v48  ;;  %v6616_v48 = vpack.c.bf16 %v68_v45, %v54_v44  ;;  %v5160_v44 = vld [vmem:[%s7061_s2 + $0xd0c] ss:$16 sps:$4 sm:$0xff]   ;;  %v5158_v45 = vld [vmem:[%s7061_s2 + $0xd08] ss:$16 sps:$4 sm:$0xff]  }
 0x152   :  { %2926 = vmatpush1.bf16.msra.mxu0 %v4996_v47  ;;  %3153 = vmatprep.subr.bf16.mxu1 %v5007_v51  ;;  %v5076_v47 = vld [vmem:[%s7061_s2 + $0x98c] ss:$16 sps:$4 sm:$0xff]  }
 0x153   :  { %2938 = vmatprep.subr.bf16.mxu0 %v5004_v50  ;;  %v5077_v50 = vld [vmem:[%s7061_s2 + $0x9a8] ss:$16 sps:$4 sm:$0xff]   ;;  %v5082_v51 = vld [vmem:[%s7061_s2 + $0x9cc] ss:$16 sps:$4 sm:$0xff]  }
 0x154   :  { %3143 = vmatmul.mubr.bf16.vlgmr.msra.gmra.mrb[4].mxu1 %v6028_v33  ;;  %v5019_v33 = vld [vmem:[%s7061_s2 + $0x84c] ss:$16 sps:$4 sm:$0xff]  }
 0x155   :  { %2928 = vmatmul.mubr.bf16.vlgmr.msra.gmra.mrb[0].mxu0 %v6454_v52  ;;  %3154 = vmatpush1.bf16.msra.mxu1 %v5005_v56  ;;  %v5088_v56 = vld [vmem:[%s7061_s2 + $0xa0c] ss:$16 sps:$4 sm:$0xff]  }
 0x156   :  { %2939 = vmatpush1.bf16.msra.mxu0 %v5002_v32  ;;  %3155 = vmatprep.subr.bf16.mxu1 %v5013_v58  ;;  %v5083_v32 = vld [vmem:[%s7061_s2 + $0x9e8] ss:$16 sps:$4 sm:$0xff]   ;;  %v5091_v58 = vld [vmem:[%s7061_s2 + $0xa2c] ss:$16 sps:$4 sm:$0xff]  }
 0x157   :  { %2940 = vmatprep.subr.bf16.mxu0 %v5010_v57  ;;  %4394 = vmatprep.mubr.msk.bf16.mxu0 %vm2676_vm0, %v6474_v59  ;;  %v5086_v57 = vld [vmem:[%s7061_s2 + $0xa08] ss:$16 sps:$4 sm:$0xff]  }
 0x158   :  { %3185 = vmatprep.mubr.bf16.mxu1 %v6042_v37  ;;  %v5025_v37 = vld [vmem:[%s7061_s2 + $0x86c] ss:$16 sps:$4 sm:$0xff]  }
 0x159   :  { %3156 = vmatpush1.bf16.msra.mxu1 %v5011_v61  ;;  %v5094_v61 = vld [vmem:[%s7061_s2 + $0xa4c] ss:$16 sps:$4 sm:$0xff]  }
 0x15a   :  { %2941 = vmatpush1.bf16.msra.mxu0 %v5008_v60  ;;  %3157 = vmatprep.subr.bf16.mxu1 %v5019_v33  ;;  %v5089_v60 = vld [vmem:[%s7061_s2 + $0xa28] ss:$16 sps:$4 sm:$0xff]   ;;  %v5100_v33 = vld [vmem:[%s7061_s2 + $0xa8c] ss:$16 sps:$4 sm:$0xff]  }
 0x15b   :  { %2942 = vmatprep.subr.bf16.mxu0 %v5016_v62  ;;  %v5092_v62 = vld [vmem:[%s7061_s2 + $0xa48] ss:$16 sps:$4 sm:$0xff]  }
 0x15d   :  { %3158 = vmatpush1.bf16.msra.mxu1 %v5017_v0  ;;  %v5103_v0 = vld [vmem:[%s7061_s2 + $0xaac] ss:$16 sps:$4 sm:$0xff]  }
 0x15e   :  { %2943 = vmatpush1.bf16.msra.mxu0 %v5014_v63  ;;  %3159 = vmatprep.subr.bf16.mxu1 %v5025_v37  ;;  %v5098_v63 = vld [vmem:[%s7061_s2 + $0xa88] ss:$16 sps:$4 sm:$0xff]   ;;  %v5106_v37 = vld [vmem:[%s7061_s2 + $0xacc] ss:$16 sps:$4 sm:$0xff]  }
 0x15f   :  { %2944 = vmatprep.subr.bf16.mxu0 %v5022_v1  ;;  %v5101_v1 = vld [vmem:[%s7061_s2 + $0xaa8] ss:$16 sps:$4 sm:$0xff]  }
 0x161   :  { %3160 = vmatpush1.bf16.msra.mxu1 %v5023_v4  ;;  %v5109_v4 = vld [vmem:[%s7061_s2 + $0xaec] ss:$16 sps:$4 sm:$0xff]  }
 0x162   :  { %2945 = vmatpush1.bf16.msra.mxu0 %v5020_v3  ;;  %3161 = vmatprep.subr.bf16.mxu1 %v5031_v8  ;;  %v5104_v3 = vld [vmem:[%s7061_s2 + $0xac8] ss:$16 sps:$4 sm:$0xff]   ;;  %v5112_v8 = vld [vmem:[%s7061_s2 + $0xb0c] ss:$16 sps:$4 sm:$0xff]  }
 0x163   :  { %2946 = vmatprep.subr.bf16.mxu0 %v5028_v7  ;;  %v5107_v7 = vld [vmem:[%s7061_s2 + $0xae8] ss:$16 sps:$4 sm:$0xff]  }
 0x165   :  { %3162 = vmatpush1.bf16.msra.mxu1 %v5029_v11  ;;  %v5115_v11 = vld [vmem:[%s7061_s2 + $0xb2c] ss:$16 sps:$4 sm:$0xff]  }
 0x166   :  { %2947 = vmatpush1.bf16.msra.mxu0 %v5026_v10  ;;  %3163 = vmatprep.subr.bf16.mxu1 %v5037_v14  ;;  %v5110_v10 = vld [vmem:[%s7061_s2 + $0xb08] ss:$16 sps:$4 sm:$0xff]   ;;  %v5118_v14 = vld [vmem:[%s7061_s2 + $0xb4c] ss:$16 sps:$4 sm:$0xff]  }
 0x167   :  { %2948 = vmatprep.subr.bf16.mxu0 %v5034_v13  ;;  %v5113_v13 = vld [vmem:[%s7061_s2 + $0xb28] ss:$16 sps:$4 sm:$0xff]  }
 0x169   :  { %3164 = vmatpush1.bf16.msra.mxu1 %v5035_v17  ;;  %v5121_v17 = vld [vmem:[%s7061_s2 + $0xb6c] ss:$16 sps:$4 sm:$0xff]  }
 0x16a   :  { %2949 = vmatpush1.bf16.msra.mxu0 %v5032_v16  ;;  %3165 = vmatprep.subr.bf16.mxu1 %v5043_v19  ;;  %v5116_v16 = vld [vmem:[%s7061_s2 + $0xb48] ss:$16 sps:$4 sm:$0xff]   ;;  %v5124_v19 = vld [vmem:[%s7061_s2 + $0xb8c] ss:$16 sps:$4 sm:$0xff]  }
 0x16b   :  { %2950 = vmatprep.subr.bf16.mxu0 %v5040_v18  ;;  %v5119_v18 = vld [vmem:[%s7061_s2 + $0xb68] ss:$16 sps:$4 sm:$0xff]  }
 0x16d   :  { %3166 = vmatpush1.bf16.msra.mxu1 %v5041_v21  ;;  %v5127_v21 = vld [vmem:[%s7061_s2 + $0xbac] ss:$16 sps:$4 sm:$0xff]  }
 0x16e   :  { %2951 = vmatpush1.bf16.msra.mxu0 %v5038_v20  ;;  %3167 = vmatprep.subr.bf16.mxu1 %v5049_v23  ;;  %v5122_v20 = vld [vmem:[%s7061_s2 + $0xb88] ss:$16 sps:$4 sm:$0xff]   ;;  %v5130_v23 = vld [vmem:[%s7061_s2 + $0xbcc] ss:$16 sps:$4 sm:$0xff]  }
 0x16f   :  { %2952 = vmatprep.subr.bf16.mxu0 %v5046_v22  ;;  %v5125_v22 = vld [vmem:[%s7061_s2 + $0xba8] ss:$16 sps:$4 sm:$0xff]  }
 0x171   :  { %3168 = vmatpush1.bf16.msra.mxu1 %v5047_v26  ;;  %v5133_v26 = vld [vmem:[%s7061_s2 + $0xbec] ss:$16 sps:$4 sm:$0xff]  }
 0x172   :  { %2953 = vmatpush1.bf16.msra.mxu0 %v5044_v25  ;;  %3169 = vmatprep.subr.bf16.mxu1 %v5055_v28  ;;  %v5128_v25 = vld [vmem:[%s7061_s2 + $0xbc8] ss:$16 sps:$4 sm:$0xff]   ;;  %v5136_v28 = vld [vmem:[%s7061_s2 + $0xc0c] ss:$16 sps:$4 sm:$0xff]  }
 0x173   :  { %2954 = vmatprep.subr.bf16.mxu0 %v5052_v27  ;;  %v5131_v27 = vld [vmem:[%s7061_s2 + $0xbe8] ss:$16 sps:$4 sm:$0xff]  }
 0x175   :  { %3170 = vmatpush1.bf16.msra.mxu1 %v5053_v30  ;;  %v5139_v30 = vld [vmem:[%s7061_s2 + $0xc2c] ss:$16 sps:$4 sm:$0xff]  }
 0x176   :  { %2955 = vmatpush1.bf16.msra.mxu0 %v5050_v29  ;;  %3171 = vmatprep.subr.bf16.mxu1 %v5061_v31  ;;  %v5134_v29 = vld [vmem:[%s7061_s2 + $0xc08] ss:$16 sps:$4 sm:$0xff]   ;;  %v5142_v31 = vld [vmem:[%s7061_s2 + $0xc4c] ss:$16 sps:$4 sm:$0xff]  }
 0x177   :  { %2956 = vmatprep.subr.bf16.mxu0 %v5058_v12  ;;  %v5137_v12 = vld [vmem:[%s7061_s2 + $0xc28] ss:$16 sps:$4 sm:$0xff]  }
 0x179   :  { %3172 = vmatpush1.bf16.msra.mxu1 %v5059_v35  ;;  %v5148_v35 = vld [vmem:[%s7061_s2 + $0xc8c] ss:$16 sps:$4 sm:$0xff]  }
 0x17a   :  { %2957 = vmatpush1.bf16.msra.mxu0 %v5056_v34  ;;  %3173 = vmatprep.subr.bf16.mxu1 %v5067_v36  ;;  %v5140_v34 = vld [vmem:[%s7061_s2 + $0xc48] ss:$16 sps:$4 sm:$0xff]   ;;  %v5317_v36 = vmov 0  }
 0x17b   :  { %2958 = vmatprep.subr.bf16.mxu0 %v5064_v55  ;;  %v5146_v55 = vld [vmem:[%s7061_s2 + $0xc88] ss:$16 sps:$4 sm:$0xff]  }
 0x17d   :  { %3174 = vmatpush1.bf16.msra.mxu1 %v5065_v39  ;;  %v5149_v39 = vld [vmem:[%s7061_s2 + $0xca8] ss:$16 sps:$4 sm:$0xff]  }
 0x17e   :  { %2959 = vmatpush1.bf16.msra.mxu0 %v5062_v38  ;;  %3175 = vmatprep.subr.bf16.mxu1 %v5073_v15  ;;  %v5151_v38 = vld [vmem:[%s7061_s2 + $0xcac] ss:$16 sps:$4 sm:$0xff]   ;;  %v5152_v15 = vld [vmem:[%s7061_s2 + $0xcc8] ss:$16 sps:$4 sm:$0xff]  }
 0x17f   :  { %2960 = vmatprep.subr.bf16.mxu0 %v5070_v40  ;;  %v5154_v40 = vld [vmem:[%s7061_s2 + $0xccc] ss:$16 sps:$4 sm:$0xff]  }
 0x181   :  { %3176 = vmatpush1.bf16.msra.mxu1 %v5071_v43  ;;  %v5155_v43 = vld [vmem:[%s7061_s2 + $0xce8] ss:$16 sps:$4 sm:$0xff]  }
 0x182   :  { %2961 = vmatpush1.bf16.msra.mxu0 %v5068_v42  ;;  %3177 = vmatprep.subr.bf16.mxu1 %v5076_v47  ;;  %v5157_v42 = vld [vmem:[%s7061_s2 + $0xcec] ss:$16 sps:$4 sm:$0xff]  }
 0x183   :  { %v5163_v47 = vld [vmem:[%s7061_s2 + $0xd2c] ss:$16 sps:$4 sm:$0xff]  }
 0x185   :  { %2971 = vmatmul.mubr.bf16.vlgmr.msra.gmra.mrb[0].mxu0 %v6616_v48  ;;  %3178 = vmatpush1.bf16.msra.mxu1 %v5074_v49  ;;  %v5161_v49 = vld [vmem:[%s7061_s2 + $0xd28] ss:$16 sps:$4 sm:$0xff]  }
 0x186   :  { %3179 = vmatprep.subr.bf16.mxu1 %v5079_v24  ;;  %3344 = vmatprep.mubr.bf16.mxu0 %v5317_v36  ;;  %v5166_v24 = vld [vmem:[%s7061_s2 + $0xd4c] ss:$16 sps:$4 sm:$0xff]  }
 0x189   :  { %3180 = vmatpush1.bf16.msra.mxu1 %v5077_v50  ;;  %v5164_v50 = vld [vmem:[%s7061_s2 + $0xd48] ss:$16 sps:$4 sm:$0xff]  }
 0x18a   :  { %3181 = vmatprep.subr.bf16.mxu1 %v5082_v51  ;;  %v5169_v51 = vld [vmem:[%s7061_s2 + $0xd6c] ss:$16 sps:$4 sm:$0xff]  }
 0x18d   :  { %3182 = vmatpush1.bf16.msra.mxu1 %v5080_v53  ;;  %v5167_v53 = vld [vmem:[%s7061_s2 + $0xd68] ss:$16 sps:$4 sm:$0xff]  }
 0x18e   :  { %3183 = vmatprep.subr.bf16.mxu1 %v5085_v54 }
 0x191   :  { %3184 = vmatpush1.bf16.msra.mxu1 %v5083_v32 }
 0x192   :  { %3196 = vmatprep.subr.bf16.mxu1 %v5088_v56 }
 0x194   :  { %3186 = vmatmul.mubr.bf16.vlgmr.msra.gmra.mrb[4].mxu1 %v6240_v41  ;;  %v5097_v41 = vld [vmem:[%s7061_s2 + $0xa6c] ss:$16 sps:$4 sm:$0xff]  }
 0x195   :  { %3197 = vmatpush1.bf16.msra.mxu1 %v5086_v57  ;;  %3228 = vmatprep.mubr.bf16.mxu1 %v6254_v46  ;;  %v5095_v46 = vld [vmem:[%s7061_s2 + $0xa68] ss:$16 sps:$4 sm:$0xff]  }
 0x196   :  { %3198 = vmatprep.subr.bf16.mxu1 %v5091_v58 }
 0x199   :  { %3199 = vmatpush1.bf16.msra.mxu1 %v5089_v60 }
 0x19a   :  { %3200 = vmatprep.subr.bf16.mxu1 %v5094_v61 }
 0x19d   :  { %3201 = vmatpush1.bf16.msra.mxu1 %v5092_v62 }
 0x19e   :  { %3202 = vmatprep.subr.bf16.mxu1 %v5097_v41 }
 0x1a1   :  { %3203 = vmatpush1.bf16.msra.mxu1 %v5095_v46  ;;  %v39_v46 = vld [vmem:[#allocation2] sm:$0xff] }
 0x1a2   :  { %3204 = vmatprep.subr.bf16.mxu1 %v5100_v33  ;;  %v40_v33 = vld [vmem:[#allocation2 + $0x8] sm:$0xff] }
 0x1a5   :  { %3205 = vmatpush1.bf16.msra.mxu1 %v5098_v63 }
 0x1a6   :  { %3206 = vmatprep.subr.bf16.mxu1 %v5103_v0  ;;  %v5178_v0 = vld [vmem:[%s7063_s4 + $0x24] ss:$8 sps:$4 sm:$0xff]  }
 0x1a9   :  { %3207 = vmatpush1.bf16.msra.mxu1 %v5101_v1  ;;  %v5176_v1 = vld [vmem:[%s7063_s4 + $0x20] ss:$8 sps:$4 sm:$0xff]  }
 0x1aa   :  { %3208 = vmatprep.subr.bf16.mxu1 %v5106_v37  ;;  %v5181_v37 = vld [vmem:[%s7063_s4 + $0x34] ss:$8 sps:$4 sm:$0xff]  }
 0x1ad   :  { %3209 = vmatpush1.bf16.msra.mxu1 %v5104_v3  ;;  %v5179_v3 = vld [vmem:[%s7063_s4 + $0x30] ss:$8 sps:$4 sm:$0xff]  }
 0x1ae   :  { %3210 = vmatprep.subr.bf16.mxu1 %v5109_v4  ;;  %v5184_v4 = vld [vmem:[%s7063_s4 + $0x44] ss:$8 sps:$4 sm:$0xff]  }
 0x1b1   :  { %3211 = vmatpush1.bf16.msra.mxu1 %v5107_v7  ;;  %v5182_v7 = vld [vmem:[%s7063_s4 + $0x40] ss:$8 sps:$4 sm:$0xff]  }
 0x1b2   :  { %3212 = vmatprep.subr.bf16.mxu1 %v5112_v8  ;;  %v5187_v8 = vld [vmem:[%s7063_s4 + $0x54] ss:$8 sps:$4 sm:$0xff]  }
 0x1b5   :  { %3213 = vmatpush1.bf16.msra.mxu1 %v5110_v10  ;;  %v5185_v10 = vld [vmem:[%s7063_s4 + $0x50] ss:$8 sps:$4 sm:$0xff]  }
 0x1b6   :  { %3214 = vmatprep.subr.bf16.mxu1 %v5115_v11  ;;  %v5190_v11 = vld [vmem:[%s7063_s4 + $0x64] ss:$8 sps:$4 sm:$0xff]  }
 0x1b9   :  { %3215 = vmatpush1.bf16.msra.mxu1 %v5113_v13  ;;  %v5188_v13 = vld [vmem:[%s7063_s4 + $0x60] ss:$8 sps:$4 sm:$0xff]  }
 0x1ba   :  { %3216 = vmatprep.subr.bf16.mxu1 %v5118_v14  ;;  %v5193_v14 = vld [vmem:[%s7063_s4 + $0x74] ss:$8 sps:$4 sm:$0xff]  }
 0x1bd   :  { %3217 = vmatpush1.bf16.msra.mxu1 %v5116_v16  ;;  %v5191_v16 = vld [vmem:[%s7063_s4 + $0x70] ss:$8 sps:$4 sm:$0xff]  }
 0x1be   :  { %3218 = vmatprep.subr.bf16.mxu1 %v5121_v17  ;;  %v5196_v17 = vld [vmem:[%s7063_s4 + $0x84] ss:$8 sps:$4 sm:$0xff]  }
 0x1c1   :  { %3219 = vmatpush1.bf16.msra.mxu1 %v5119_v18  ;;  %v5194_v18 = vld [vmem:[%s7063_s4 + $0x80] ss:$8 sps:$4 sm:$0xff]  }
 0x1c2   :  { %3220 = vmatprep.subr.bf16.mxu1 %v5124_v19  ;;  %v5199_v19 = vld [vmem:[%s7063_s4 + $0x94] ss:$8 sps:$4 sm:$0xff]  }
 0x1c5   :  { %3221 = vmatpush1.bf16.msra.mxu1 %v5122_v20  ;;  %v5197_v20 = vld [vmem:[%s7063_s4 + $0x90] ss:$8 sps:$4 sm:$0xff]  }
 0x1c6   :  { %3222 = vmatprep.subr.bf16.mxu1 %v5127_v21  ;;  %v5202_v21 = vld [vmem:[%s7063_s4 + $0xa4] ss:$8 sps:$4 sm:$0xff]  }
 0x1c9   :  { %3223 = vmatpush1.bf16.msra.mxu1 %v5125_v22  ;;  %v5200_v22 = vld [vmem:[%s7063_s4 + $0xa0] ss:$8 sps:$4 sm:$0xff]  }
 0x1ca   :  { %3224 = vmatprep.subr.bf16.mxu1 %v5130_v23  ;;  %v5205_v23 = vld [vmem:[%s7063_s4 + $0xb4] ss:$8 sps:$4 sm:$0xff]  }
 0x1cd   :  { %3225 = vmatpush1.bf16.msra.mxu1 %v5128_v25  ;;  %v5203_v25 = vld [vmem:[%s7063_s4 + $0xb0] ss:$8 sps:$4 sm:$0xff]  }
 0x1ce   :  { %3226 = vmatprep.subr.bf16.mxu1 %v5133_v26  ;;  %v5208_v26 = vld [vmem:[%s7063_s4 + $0xc4] ss:$8 sps:$4 sm:$0xff]  }
 0x1d1   :  { %3227 = vmatpush1.bf16.msra.mxu1 %v5131_v27  ;;  %v5206_v27 = vld [vmem:[%s7063_s4 + $0xc0] ss:$8 sps:$4 sm:$0xff]  }
 0x1d2   :  { %3239 = vmatprep.subr.bf16.mxu1 %v5136_v28  ;;  %v5211_v28 = vld [vmem:[%s7063_s4 + $0xd4] ss:$8 sps:$4 sm:$0xff]  }
 0x1d4   :  { %3229 = vmatmul.mubr.bf16.vlgmr.msra.gmra.mrb[4].mxu1 %v6454_v52  ;;  %v5145_v52 = vld [vmem:[%s7061_s2 + $0xc6c] ss:$16 sps:$4 sm:$0xff]  }
 0x1d5   :  { %3240 = vmatpush1.bf16.msra.mxu1 %v5134_v29  ;;  %4395 = vmatprep.mubr.msk.bf16.mxu1 %vm2676_vm0, %v6474_v59  ;;  %v5143_v59 = vld [vmem:[%s7061_s2 + $0xc68] ss:$16 sps:$4 sm:$0xff]  }
 0x1d6   :  { %3241 = vmatprep.subr.bf16.mxu1 %v5139_v30  ;;  %v5209_v29 = vld [vmem:[%s7063_s4 + $0xd0] ss:$8 sps:$4 sm:$0xff]   ;;  %v5212_v30 = vld [vmem:[%s7063_s4 + $0xe0] ss:$8 sps:$4 sm:$0xff]  }
 0x1d9   :  { %3242 = vmatpush1.bf16.msra.mxu1 %v5137_v12  ;;  %v5214_v12 = vld [vmem:[%s7063_s4 + $0xe4] ss:$8 sps:$4 sm:$0xff]  }
 0x1da   :  { %3243 = vmatprep.subr.bf16.mxu1 %v5142_v31  ;;  %v5217_v31 = vld [vmem:[%s7063_s4 + $0xf4] ss:$8 sps:$4 sm:$0xff]  }
 0x1dd   :  { %3244 = vmatpush1.bf16.msra.mxu1 %v5140_v34  ;;  %v5215_v34 = vld [vmem:[%s7063_s4 + $0xf0] ss:$8 sps:$4 sm:$0xff]  }
 0x1de   :  { %3245 = vmatprep.subr.bf16.mxu1 %v5145_v52  ;;  %v5220_v52 = vld [vmem:[%s7063_s4 + $0x104] ss:$8 sps:$4 sm:$0xff]  }
 0x1e1   :  { %3246 = vmatpush1.bf16.msra.mxu1 %v5143_v59 }
 0x1e2   :  { %3247 = vmatprep.subr.bf16.mxu1 %v5148_v35 }
 0x1e5   :  { %3248 = vmatpush1.bf16.msra.mxu1 %v5146_v55 }
 0x1e6   :  { %3249 = vmatprep.subr.bf16.mxu1 %v5151_v38 }
 0x1e9   :  { %3250 = vmatpush1.bf16.msra.mxu1 %v5149_v39 }
 0x1ea   :  { %3251 = vmatprep.subr.bf16.mxu1 %v5154_v40 }
 0x1ed   :  { %3252 = vmatpush1.bf16.msra.mxu1 %v5152_v15  ;;  %v3288_v15 = vlaneseq }
 0x1ee   :  { %3253 = vmatprep.subr.bf16.mxu1 %v5157_v42 }
 0x1ef   :  { %v6926_v42 = vshrl.u32 %v3288_v15, 7 }
 0x1f1   :  { %3254 = vmatpush1.bf16.msra.mxu1 %v5155_v43  ;;  %v3290_v43 = vsub.s32 0, %v6926_v42 }
 0x1f2   :  { %3255 = vmatprep.subr.bf16.mxu1 %v5160_v44  ;;  %v6932_v44 = vld [vmem:[%s7062_s3] sm:$0xf] }
 0x1f5   :  { %3256 = vmatpush1.bf16.msra.mxu1 %v5158_v45  ;;  %v3294_v45 = vsub.s32 1, %v6926_v42 }
 0x1f6   :  { %3257 = vmatprep.subr.bf16.mxu1 %v5163_v47  ;;  %v3291_v47 = vrot.slane %v6932_v44, %v3290_v43 }
 0x1f9   :  { %3258 = vmatpush1.bf16.msra.mxu1 %v5161_v49 }
 0x1fa   :  { %3259 = vmatprep.subr.bf16.mxu1 %v5166_v24 }
 0x1fd   :  { %3260 = vmatpush1.bf16.msra.mxu1 %v5164_v50 }
 0x1fe   :  { %3261 = vmatprep.subr.bf16.mxu1 %v5169_v51 }
 0x201   :  { %3262 = vmatpush1.bf16.msra.mxu1 %v5167_v53 }
 0x204   :  { %3272 = vmatmul.mubr.bf16.vlgmr.msra.gmra.mrb[4].mxu1 %v6616_v48  ;;  %v6820_v48 = vpack.c.bf16 %v40_v33, %v39_v46  ;;  %v5218_v46 = vld [vmem:[%s7063_s4 + $0x100] ss:$8 sps:$4 sm:$0xff]   ;;  %v5223_v33 = vld [vmem:[%s7063_s4 + $0x114] ss:$8 sps:$4 sm:$0xff]  }
 0x205   :  { %3387 = vmatprep.mubr.bf16.mxu1 %v5317_v36 }
 0x258   :  { %v2972_v54 = vpop.f32.mrb[0].mxu0 }
 0x259   :  { %v4463_v32 = vadd.f32 %v2972_v54, %v6320_v2  ;;  %v2974_v56 = vpop.f32.mrb[1].mxu0  ;;  %v5170_v2 = vld [vmem:[%s7063_s4] ss:$8 sps:$4 sm:$0xff]  }
 0x25a   :  { %v4464_v57 = vadd.f32 %v2974_v56, %v6328_v5  ;;  %v2976_v58 = vpop.f32.mrb[2].mxu0  ;;  %v5172_v5 = vld [vmem:[%s7063_s4 + $0x4] ss:$8 sps:$4 sm:$0xff]  }
 0x25b   :  { %v4465_v60 = vadd.f32 %v2976_v58, %v6330_v6  ;;  %v2978_v61 = vpop.f32.mrb[3].mxu0  ;;  %v5175_v6 = vld [vmem:[%s7063_s4 + $0x14] ss:$8 sps:$4 sm:$0xff]  }
 0x25c   :  { %v4466_v62 = vadd.f32 %v2978_v61, %v6338_v9  ;;  %v5173_v9 = vld [vmem:[%s7063_s4 + $0x10] ss:$8 sps:$4 sm:$0xff]  }
 0x25d   :  { %v3282_v41 = vpack.c.bf16 %v4465_v60, %v4463_v32 }
 0x25e   :  { %v3283_v63 = vpack.c.bf16 %v4466_v62, %v4464_v57 }
 0x260   :  { %3312 = vmatprep.subr.bf16.mxu0 %v3283_v63  ;;  %v5221_v63 = vld [vmem:[%s7063_s4 + $0x110] ss:$8 sps:$4 sm:$0xff]  }
 0x261   :  { %3313 = vmatpush1.bf16.msra.mxu0 %v3282_v41 }
 0x262   :  { %3794 = vmatprep.subr.bf16.mxu0 %v5172_v5  ;;  %v5224_v5 = vld [vmem:[%s7063_s4 + $0x120] ss:$8 sps:$4 sm:$0xff]  }
 0x264   :  { %4396 = vmatmul.mubr.msk.bf16.vlgmr.msra.gmra.mrb[4].mxu0 %vm3308_vm1, %v6820_v48 }
 0x265   :  { %3795 = vmatpush1.bf16.msra.mxu0 %v5170_v2  ;;  %v5226_v2 = vld [vmem:[%s7063_s4 + $0x124] ss:$8 sps:$4 sm:$0xff]  }
 0x266   :  { %3796 = vmatprep.subr.bf16.mxu0 %v5175_v6  ;;  %v5229_v6 = vld [vmem:[%s7063_s4 + $0x134] ss:$8 sps:$4 sm:$0xff]  }
 0x269   :  { %3797 = vmatpush1.bf16.msra.mxu0 %v5173_v9  ;;  %v5227_v9 = vld [vmem:[%s7063_s4 + $0x130] ss:$8 sps:$4 sm:$0xff]  }
 0x26a   :  { %3798 = vmatprep.subr.bf16.mxu0 %v5178_v0  ;;  %v5232_v0 = vld [vmem:[%s7063_s4 + $0x144] ss:$8 sps:$4 sm:$0xff]  }
 0x26d   :  { %3799 = vmatpush1.bf16.msra.mxu0 %v5176_v1  ;;  %v5230_v1 = vld [vmem:[%s7063_s4 + $0x140] ss:$8 sps:$4 sm:$0xff]  }
 0x26e   :  { %3800 = vmatprep.subr.bf16.mxu0 %v5181_v37  ;;  %v5235_v37 = vld [vmem:[%s7063_s4 + $0x154] ss:$8 sps:$4 sm:$0xff]  }
 0x271   :  { %3801 = vmatpush1.bf16.msra.mxu0 %v5179_v3  ;;  %v5233_v3 = vld [vmem:[%s7063_s4 + $0x150] ss:$8 sps:$4 sm:$0xff]  }
 0x272   :  { %3802 = vmatprep.subr.bf16.mxu0 %v5184_v4  ;;  %v5238_v4 = vld [vmem:[%s7063_s4 + $0x164] ss:$8 sps:$4 sm:$0xff]  }
 0x275   :  { %3803 = vmatpush1.bf16.msra.mxu0 %v5182_v7  ;;  %v5236_v7 = vld [vmem:[%s7063_s4 + $0x160] ss:$8 sps:$4 sm:$0xff]  }
 0x276   :  { %3804 = vmatprep.subr.bf16.mxu0 %v5187_v8  ;;  %v5241_v8 = vld [vmem:[%s7063_s4 + $0x174] ss:$8 sps:$4 sm:$0xff]  }
 0x279   :  { %3805 = vmatpush1.bf16.msra.mxu0 %v5185_v10  ;;  %v5239_v10 = vld [vmem:[%s7063_s4 + $0x170] ss:$8 sps:$4 sm:$0xff]  }
 0x27a   :  { %3806 = vmatprep.subr.bf16.mxu0 %v5190_v11  ;;  %v5244_v11 = vld [vmem:[%s7063_s4 + $0x184] ss:$8 sps:$4 sm:$0xff]  }
 0x27d   :  { %3807 = vmatpush1.bf16.msra.mxu0 %v5188_v13  ;;  %v5242_v13 = vld [vmem:[%s7063_s4 + $0x180] ss:$8 sps:$4 sm:$0xff]  }
 0x27e   :  { %3808 = vmatprep.subr.bf16.mxu0 %v5193_v14  ;;  %v5247_v14 = vld [vmem:[%s7063_s4 + $0x194] ss:$8 sps:$4 sm:$0xff]  }
 0x281   :  { %3809 = vmatpush1.bf16.msra.mxu0 %v5191_v16  ;;  %v5245_v16 = vld [vmem:[%s7063_s4 + $0x190] ss:$8 sps:$4 sm:$0xff]  }
 0x282   :  { %3810 = vmatprep.subr.bf16.mxu0 %v5196_v17  ;;  %v5250_v17 = vld [vmem:[%s7063_s4 + $0x1a4] ss:$8 sps:$4 sm:$0xff]  }
 0x285   :  { %3811 = vmatpush1.bf16.msra.mxu0 %v5194_v18  ;;  %v5248_v18 = vld [vmem:[%s7063_s4 + $0x1a0] ss:$8 sps:$4 sm:$0xff]  }
 0x286   :  { %3812 = vmatprep.subr.bf16.mxu0 %v5199_v19  ;;  %v5253_v19 = vld [vmem:[%s7063_s4 + $0x1b4] ss:$8 sps:$4 sm:$0xff]  }
 0x289   :  { %3813 = vmatpush1.bf16.msra.mxu0 %v5197_v20  ;;  %v5251_v20 = vld [vmem:[%s7063_s4 + $0x1b0] ss:$8 sps:$4 sm:$0xff]  }
 0x28a   :  { %3814 = vmatprep.subr.bf16.mxu0 %v5202_v21  ;;  %v5256_v21 = vld [vmem:[%s7063_s4 + $0x1c4] ss:$8 sps:$4 sm:$0xff]  }
 0x28d   :  { %3815 = vmatpush1.bf16.msra.mxu0 %v5200_v22  ;;  %v5254_v22 = vld [vmem:[%s7063_s4 + $0x1c0] ss:$8 sps:$4 sm:$0xff]  }
 0x28e   :  { %3816 = vmatprep.subr.bf16.mxu0 %v5205_v23  ;;  %v5259_v23 = vld [vmem:[%s7063_s4 + $0x1d4] ss:$8 sps:$4 sm:$0xff]  }
 0x291   :  { %3817 = vmatpush1.bf16.msra.mxu0 %v5203_v25  ;;  %v5257_v25 = vld [vmem:[%s7063_s4 + $0x1d0] ss:$8 sps:$4 sm:$0xff]  }
 0x292   :  { %3818 = vmatprep.subr.bf16.mxu0 %v5208_v26  ;;  %v5262_v26 = vld [vmem:[%s7063_s4 + $0x1e4] ss:$8 sps:$4 sm:$0xff]  }
 0x295   :  { %3819 = vmatpush1.bf16.msra.mxu0 %v5206_v27  ;;  %v5260_v27 = vld [vmem:[%s7063_s4 + $0x1e0] ss:$8 sps:$4 sm:$0xff]  }
 0x296   :  { %3820 = vmatprep.subr.bf16.mxu0 %v5211_v28  ;;  %v5265_v28 = vld [vmem:[%s7063_s4 + $0x1f4] ss:$8 sps:$4 sm:$0xff]  }
 0x299   :  { %3821 = vmatpush1.bf16.msra.mxu0 %v5209_v29  ;;  %v5263_v29 = vld [vmem:[%s7063_s4 + $0x1f0] ss:$8 sps:$4 sm:$0xff]  }
 0x29a   :  { %3822 = vmatprep.subr.bf16.mxu0 %v5214_v12  ;;  %v3302_v12 = vsub.s32 3, %v6926_v42 }
 0x29d   :  { %3823 = vmatpush1.bf16.msra.mxu0 %v5212_v30  ;;  %v3298_v30 = vsub.s32 2, %v6926_v42 }
 0x29e   :  { %3824 = vmatprep.subr.bf16.mxu0 %v5217_v31 }
 0x29f   :  { %v3299_v31 = vrot.slane %v6932_v44, %v3298_v30 }
 0x2a1   :  { %3825 = vmatpush1.bf16.msra.mxu0 %v5215_v34  ;;  %v3303_v34 = vrot.slane %v6932_v44, %v3302_v12 }
 0x2a2   :  { %3837 = vmatprep.subr.bf16.mxu0 %v5220_v52 }
 0x2d7   :  { %v3273_v59 = vpop.f32.mrb[4].mxu1 }
 0x2d8   :  { %v3275_v35 = vpop.f32.mrb[5].mxu1 }
 0x2d9   :  { %v3277_v55 = vpop.f32.mrb[6].mxu1 }
 0x2da   :  { %v3284_v38 = vpack.c.bf16 %v3277_v55, %v3273_v59  ;;  %v3279_v39 = vpop.f32.mrb[7].mxu1 }
 0x2db   :  { %v3285_v40 = vpack.c.bf16 %v3279_v39, %v3275_v35 }
 0x2dd   :  { %3355 = vmatprep.subr.bf16.mxu1 %v3285_v40 }
 0x2de   :  { %3356 = vmatpush1.bf16.msra.mxu1 %v3284_v38 }
 0x2e1   :  { %4397 = vmatmul.mubr.msk.bf16.vlgmr.msra.gmra.mrb[8].mxu1 %vm3308_vm1, %v6820_v48 }
 0x2e2   :  { %3926 = vmatprep.mubr.bf16.mxu1 %v5317_v36  ;;  %v3295_v36 = vrot.slane %v6932_v44, %v3294_v45 }
 0x337   :  { %v3346_v49 = vpop.f32.mrb[4].mxu0 }
 0x338   :  { %v3347_v24 = vadd.f32 %v3346_v49, %v3291_v47  ;;  %v3348_v50 = vpop.f32.mrb[5].mxu0 }
 0x339   :  { %v3349_v51 = vadd.f32 %v3348_v50, %v3295_v36  ;;  %v3350_v53 = vpop.f32.mrb[6].mxu0 }
 0x33a   :  { %v3398_v54 = vmax.f32 %v3347_v24, 0.0  ;;  %v3351_v32 = vadd.f32 %v3350_v53, %v3291_v47  ;;  %v3352_v56 = vpop.f32.mrb[7].mxu0 }
 0x33b   :  { %v3399_v57 = vmax.f32 %v3349_v51, 0.0  ;;  %v3353_v58 = vadd.f32 %v3352_v56, %v3295_v36 }
 0x33c   :  { %v3402_v60 = vmax.f32 %v3351_v32, 0.0 }
 0x33d   :  { %v3403_v61 = vmax.f32 %v3353_v58, 0.0  ;;  %v3882_v58 = vld [vmem:[%s7064_s5] sm:$0x3]  ;;  %s5288_s5 = scalar_lea.vmem %s3951_s19, 512 }
 0x33e   :  { %v3406_v62 = vpack.c.bf16 %v3402_v60, %v3398_v54  ;;  %v3887_v60 = vrot.slane %v3882_v58, %v3290_v43  ;;  %p5289_p8 = scmp.ne.s32.totalorder %s3951_s19, %s5288_s5  ;;  %p5294_p10 = scmp.lt.s32.totalorder %s5288_s5, %s5288_s5 }
 0x33f   :  { %v3407_v41 = vpack.c.bf16 %v3403_v61, %v3399_v57  ;;  %v3891_v61 = vrot.slane %v3882_v58, %v3294_v45 }
 0x340   :  { %p5295_p11 = por %p5294_p10, %p5293_p9 }
 0x341   :  { %3826 = vmatprep.mubr.bf16.mxu0 %v3407_v41 }
 0x342   :  { %3827 = vmatmul.mubr.bf16.vlgmr.msra.gmra.mrb[8].mxu0 %v3406_v62  ;;  %p5296_p12 = pnand %p5295_p11, %p5289_p8 }
 0x343   :  { %3838 = vmatpush1.bf16.msra.mxu0 %v5218_v46 }
 0x344   :  { %3839 = vmatprep.subr.bf16.mxu0 %v5223_v33 }
 0x347   :  { %3840 = vmatpush1.bf16.msra.mxu0 %v5221_v63 }
 0x348   :  { %3841 = vmatprep.subr.bf16.mxu0 %v5226_v2 }
 0x34b   :  { %3842 = vmatpush1.bf16.msra.mxu0 %v5224_v5 }
 0x34c   :  { %3843 = vmatprep.subr.bf16.mxu0 %v5229_v6 }
 0x34f   :  { %3844 = vmatpush1.bf16.msra.mxu0 %v5227_v9 }
 0x350   :  { %3845 = vmatprep.subr.bf16.mxu0 %v5232_v0 }
 0x353   :  { %3846 = vmatpush1.bf16.msra.mxu0 %v5230_v1 }
 0x354   :  { %3847 = vmatprep.subr.bf16.mxu0 %v5235_v37 }
 0x357   :  { %3848 = vmatpush1.bf16.msra.mxu0 %v5233_v3 }
 0x358   :  { %3849 = vmatprep.subr.bf16.mxu0 %v5238_v4 }
 0x35b   :  { %3850 = vmatpush1.bf16.msra.mxu0 %v5236_v7 }
 0x35c   :  { %3851 = vmatprep.subr.bf16.mxu0 %v5241_v8 }
 0x35f   :  { %3852 = vmatpush1.bf16.msra.mxu0 %v5239_v10 }
 0x360   :  { %3853 = vmatprep.subr.bf16.mxu0 %v5244_v11 }
 0x363   :  { %3854 = vmatpush1.bf16.msra.mxu0 %v5242_v13 }
 0x364   :  { %3855 = vmatprep.subr.bf16.mxu0 %v5247_v14 }
 0x367   :  { %3856 = vmatpush1.bf16.msra.mxu0 %v5245_v16 }
 0x368   :  { %3857 = vmatprep.subr.bf16.mxu0 %v5250_v17 }
 0x36b   :  { %3858 = vmatpush1.bf16.msra.mxu0 %v5248_v18 }
 0x36c   :  { %3859 = vmatprep.subr.bf16.mxu0 %v5253_v19 }
 0x36f   :  { %3860 = vmatpush1.bf16.msra.mxu0 %v5251_v20 }
 0x370   :  { %3861 = vmatprep.subr.bf16.mxu0 %v5256_v21 }
 0x373   :  { %3862 = vmatpush1.bf16.msra.mxu0 %v5254_v22 }
 0x374   :  { %3863 = vmatprep.subr.bf16.mxu0 %v5259_v23 }
 0x377   :  { %3864 = vmatpush1.bf16.msra.mxu0 %v5257_v25 }
 0x378   :  { %3865 = vmatprep.subr.bf16.mxu0 %v5262_v26 }
 0x37b   :  { %3866 = vmatpush1.bf16.msra.mxu0 %v5260_v27 }
 0x37c   :  { %3867 = vmatprep.subr.bf16.mxu0 %v5265_v28 }
 0x37f   :  { %3868 = vmatpush1.bf16.msra.mxu0 %v5263_v29 }
 0x3b4   :  { %v3389_v52 = vpop.f32.mrb[8].mxu1 }
 0x3b5   :  { %v3390_v59 = vadd.f32 %v3389_v52, %v3299_v31  ;;  %v3391_v35 = vpop.f32.mrb[9].mxu1 }
 0x3b6   :  { %v3392_v55 = vadd.f32 %v3391_v35, %v3303_v34  ;;  %v3393_v38 = vpop.f32.mrb[10].mxu1 }
 0x3b7   :  { %v3394_v39 = vadd.f32 %v3393_v38, %v3299_v31  ;;  %v3395_v40 = vpop.f32.mrb[11].mxu1  ;;  %v3400_v47 = vmax.f32 %v3390_v59, 0.0 }
 0x3b8   :  { %v3396_v15 = vadd.f32 %v3395_v40, %v3303_v34  ;;  %v3401_v49 = vmax.f32 %v3392_v55, 0.0 }
 0x3b9   :  { %v3404_v36 = vmax.f32 %v3394_v39, 0.0 }
 0x3ba   :  { %v3405_v24 = vmax.f32 %v3396_v15, 0.0 }
 0x3bb   :  { %v3408_v50 = vpack.c.bf16 %v3404_v36, %v3400_v47 }
 0x3bc   :  { %v3409_v51 = vpack.c.bf16 %v3405_v24, %v3401_v49 }
 0x3be   :  { %3869 = vmatprep.mubr.bf16.mxu0 %v3409_v51 }
 0x3bf   :  { %3870 = vmatmul.mubr.bf16.vlgmr.msra.gmra.mrb[8].mxu0 %v3408_v50 }
 0x492   :  { %v3871_v53 = vpop.f32.mrb[8].mxu0 }
 0x493   :  { %v3873_v54 = vpop.f32.mrb[9].mxu0 }
 0x494   :  { %v3875_v32 = vpop.f32.mrb[10].mxu0 }
 0x495   :  { %v3880_v44 = vpack.c.bf16 %v3875_v32, %v3871_v53  ;;  %v3877_v56 = vpop.f32.mrb[11].mxu0 }
 0x496   :  { %v3881_v57 = vpack.c.bf16 %v3877_v56, %v3873_v54 }
 0x498   :  { %3894 = vmatprep.subr.bf16.mxu1 %v3881_v57 }
 0x499   :  { %3895 = vmatpush1.bf16.msra.mxu1 %v3880_v44 }
 0x49c   :  { %4462 = vmatmul.mubr.msk.bf16.vlgmr.msra.gmra.mrb[12].mxu1 %vm3308_vm1, %v6820_v48 }
 0x56f   :  { %v3928_v62 = vpop.f32.mrb[12].mxu1 }
 0x570   :  { %v3929_v41 = vadd.f32 %v3928_v62, %v3887_v60  ;;  %v3930_v46 = vpop.f32.mrb[13].mxu1 }
 0x571   :  { %v3931_v33 = vadd.f32 %v3930_v46, %v3891_v61  ;;  %v3932_v63 = vpop.f32.mrb[14].mxu1 }
 0x572   :  { %v3937_v2 = vmax.f32 %v3929_v41, 0.0  ;;  %v3933_v5 = vadd.f32 %v3932_v63, %v3887_v60  ;;  %v3934_v48 = vpop.f32.mrb[15].mxu1 }
 0x573   :  { %v3938_v6 = vmax.f32 %v3931_v33, 0.0  ;;  %v3935_v9 = vadd.f32 %v3934_v48, %v3891_v61 }
 0x574   :  { %3941 = vst [vmem:[#allocation5] sm:$0xff] %v3937_v2  ;;  %v3939_v0 = vmax.f32 %v3933_v5, 0.0 }
 0x575   :  { %3942 = vst [vmem:[#allocation5 + $0x8] sm:$0xff] %v3938_v6  ;;  %v3940_v43 = vmax.f32 %v3935_v9, 0.0 }
 0x576   :  { %3943 = vst [vmem:[#allocation5 + $0x10] sm:$0xff] %v3939_v0 }
 0x577   :  { %3944 = vst [vmem:[#allocation5 + $0x18] sm:$0xff] %v3940_v43 }
 0x578   :  { %5299 = shalt.err (!%p5296_p12)
}
 0x579   :  { %s5300_s22 = scalar_lea.hbm %s7065_s6, 512 }
 0x57a   :  { %p5301_p13 = scmp.ne.s32.totalorder %s7065_s6, %s5300_s22  ;;  %p5304_p0 = scmp.lt.u32.totalorder %s5300_s22, %s7065_s6 }
 0x57c   :  { %p5306_p1 = pnand %p5304_p0, %p5301_p13 }
 0x57e   :  { %5309 = shalt.err (!%p5306_p1)
}
 0x57f   :  { %s5319_s26 = smov 256   ;;  %s5320_s27 = smov 16  }
 0x580   :  { %3956 = dma.vmem_to_hbm [thread:$0]  %s3951_s19, 512, %s7065_s6, [#allocation4], %s5319_s26, %s5319_s26, %s5320_s27  }
 0x581   :  { %5312 = dma.done.wait [#allocation4], 512  }
 0x582   :  { %5313 = vsyncadd [#allocation4], 4294966784 }
 0x583   :  { %3960 = vsyncpa [#allocation3], 1 }
 0x584   :  { %3961 = vsyncpa [#allocation4], 1 }

</bundles_post_ra>
